<compile_context>
chip_gen: v7x
topology: tpu7x:2x2x1
jax: 0.10.0
libtpu: 0.0.40
codegen_flags: <defaults>
</compile_context>

<pallas_src>
import numpy as np
import jax
import jax.numpy as jnp
from jax.experimental import pallas as pl
from jax.experimental.pallas import tpu as pltpu


# ----------------------------- fused Pallas kernel ----------------------------

def _sccm_fused_kernel(x_ref,
                       c1w_ref, c1b_ref, c2w_ref, c2b_ref,
                       f1w_ref, f1b_ref, f2w_ref, f2b_ref, f3w_ref, f3b_ref,
                       o_ref):
    """(tm, C*H*W) rows -> (tm, cls_num+1) log-probs, all intermediates on-chip."""

    def lrelu(v):                      # f32 VPU epilogue
        return jnp.where(v >= 0, v, 0.01 * v)

    def mm(a, w_ref, b_ref):           # bf16 MXU matmul, f32 accumulate + bias
        return jnp.dot(a.astype(jnp.bfloat16), w_ref[...],
                       preferred_element_type=jnp.float32) + b_ref[...]

    x = x_ref[...]
    h = lrelu(mm(x, c1w_ref, c1b_ref))     # conv1 (dense-lowered) + LeakyReLU
    h = lrelu(mm(h, c2w_ref, c2b_ref))     # conv2 (dense-lowered) + LeakyReLU
    h = lrelu(mm(h, f1w_ref, f1b_ref))     # fc1 + LeakyReLU
    # Dropout(p=0.5) is identity in eval mode.
    h = lrelu(mm(h, f2w_ref, f2b_ref))     # fc2 + LeakyReLU
    y = mm(h, f3w_ref, f3b_ref)            # fc3 logits (f32)

    z = y - jnp.max(y, axis=-1, keepdims=True)          # log_softmax, f32
    o_ref[...] = z - jnp.log(jnp.sum(jnp.exp(z), axis=-1, keepdims=True))


# ------------------------------- Pallas wrapper --------------------------------

def sccm_fused_call(feat0, p, *, row_block=256):
    """feat0: (M, C*H*W) NCHW-flattened rows -> (M, cls_num+1) log-probs."""
    M, K0 = feat0.shape
    N1 = p["c1_w"].shape[1]
    N2 = p["c2_w"].shape[1]
    N3 = p["fc1_w"].shape[1]
    N4 = p["fc2_w"].shape[1]
    N5 = p["fc3_w"].shape[1]

    # Single block at small M (demo shapes); only tile/parallelize the row axis
    # once per-block work is large enough to amortize per-step overhead.
    if M >= 2 * row_block and M % row_block == 0:
        tm, sem = row_block, ("parallel",)
    else:
        tm, sem = M, ("arbitrary",)

    def pinned(shape):  # weight/bias blocks: constant index -> VMEM-resident
        return pl.BlockSpec(shape, lambda i: (0, 0))

    return pl.pallas_call(
        _sccm_fused_kernel,
        grid=(M // tm,),
        out_shape=jax.ShapeDtypeStruct((M, N5), jnp.float32),
        in_specs=[
            pl.BlockSpec((tm, K0), lambda i: (i, 0)),
            pinned((K0, N1)), pinned((1, N1)),
            pinned((N1, N2)), pinned((1, N2)),
            pinned((N2, N3)), pinned((1, N3)),
            pinned((N3, N4)), pinned((1, N4)),
            pinned((N4, N5)), pinned((1, N5)),
        ],
        out_specs=pl.BlockSpec((tm, N5), lambda i: (i, 0)),
        compiler_params=pltpu.CompilerParams(dimension_semantics=sem),
    )(feat0, p["c1_w"], p["c1_b"], p["c2_w"], p["c2_b"],
      p["fc1_w"], p["fc1_b"], p["fc2_w"], p["fc2_b"], p["fc3_w"], p["fc3_b"])


def sccm_forward(x, params):
    """x: (B, Pn, C, H, W) NCHW windows -> (Pn, B, cls_num+1) log-probs."""
    B, Pn = x.shape[0], x.shape[1]
    feat0 = x.reshape(B * Pn, -1)                 # contiguous NCHW flatten (no copy)
    logp = sccm_fused_call(feat0, params)         # (B*Pn, cls_num+1)
    return logp.reshape(B, Pn, -1).transpose(1, 0, 2)   # tiny output transpose


# ------------------------- host-side greedy decode (port) ----------------------

def naive_decode(pred):
    seq = np.argmax(pred, axis=1)
    out = []
    for i, char in enumerate(seq):
        if out:
            if char != 0 and char != seq[i - 1]:
                out.append(int(char))
        elif char != 0:
            out.append(int(char))
    return out


def decode(result):
    result = np.transpose(np.asarray(result), (1, 0, 2))   # (B, Pn, cls)
    return [naive_decode(result[i]) for i in range(result.shape[0])]


# ------------------------------- parameter init --------------------------------

def _lower_conv(w_oihw, b, cin, hin, win, *, stride=2, pad=1):
    """Exactly lower a 3x3 stride-2 (pad=1) conv to a dense matrix that maps the
    NCHW-flattened input to the NCHW-flattened output.  Init-time only."""
    n = cin * hin * win
    eye = jnp.eye(n, dtype=jnp.float32).reshape(n, cin, hin, win)
    out = jax.lax.conv_general_dilated(
        eye, w_oihw, window_strides=(stride, stride),
        padding=((pad, pad), (pad, pad)),
        dimension_numbers=("NCHW", "OIHW", "NCHW"))
    cout, ho, wo = out.shape[1], out.shape[2], out.shape[3]
    L = out.reshape(n, cout * ho * wo)                      # entries == weight values
    bl = jnp.repeat(b.reshape(-1), ho * wo).reshape(1, cout * ho * wo)
    return L.astype(jnp.bfloat16), bl.astype(jnp.float32), cout, ho, wo


def init_params(key, cin, height, cls_num):
    depth, channel = 2, 16
    size = height // 2 ** depth
    in_channel = channel * size * size

    def lin(key, fan_in, fan_out):
        k1, k2 = jax.random.split(key)
        bound = 1.0 / np.sqrt(fan_in)
        w = jax.random.uniform(k1, (fan_in, fan_out), jnp.float32, -bound, bound)
        b = jax.random.uniform(k2, (1, fan_out), jnp.float32, -bound, bound)
        return w, b

    def conv(key, ci, co, k=3):
        k1, k2 = jax.random.split(key)
        bound = 1.0 / np.sqrt(ci * k * k)
        w = jax.random.uniform(k1, (co, ci, k, k), jnp.float32, -bound, bound)
        b = jax.random.uniform(k2, (co,), jnp.float32, -bound, bound)
        return w, b

    keys = jax.random.split(key, 5)
    c1_w, c1_b = conv(keys[0], cin, 8)
    c2_w, c2_b = conv(keys[1], 8, channel)
    w1, b1 = lin(keys[2], in_channel, 900)
    w2, b2 = lin(keys[3], 900, 200)
    w3, b3 = lin(keys[4], 200, cls_num + 1)

    p = {}
    p["c1_w"], p["c1_b"], co1, ho1, wo1 = _lower_conv(c1_w, c1_b, cin, height, height)
    p["c2_w"], p["c2_b"], co2, ho2, wo2 = _lower_conv(c2_w, c2_b, co1, ho1, wo1)
    assert co2 * ho2 * wo2 == in_channel
    p["fc1_w"], p["fc1_b"] = w1.astype(jnp.bfloat16), b1
    p["fc2_w"], p["fc2_b"] = w2.astype(jnp.bfloat16), b2
    p["fc3_w"], p["fc3_b"] = w3.astype(jnp.bfloat16), b3

    # f32 copies of the bf16-rounded weights in torch layouts, for the
    # pure-JAX reference check in __main__.
    raw = dict(
        c1_w=c1_w.astype(jnp.bfloat16).astype(jnp.float32), c1_b=c1_b,
        c2_w=c2_w.astype(jnp.bfloat16).astype(jnp.float32), c2_b=c2_b,
        fc1_w=w1.astype(jnp.bfloat16).astype(jnp.float32), fc1_b=b1,
        fc2_w=w2.astype(jnp.bfloat16).astype(jnp.float32), fc2_b=b2,
        fc3_w=w3.astype(jnp.bfloat16).astype(jnp.float32), fc3_b=b3,
    )
    return p, raw


# ----------------------- pure-JAX NCHW reference (validation) ------------------

def reference_forward(x, raw):
    B, Pn = x.shape[0], x.shape[1]
    xb = x.reshape((B * Pn,) + x.shape[2:])

    def lrelu(v):
        return jnp.where(v >= 0, v, 0.01 * v)

    def conv(h, w, b):
        y = jax.lax.conv_general_dilated(
            h, w, window_strides=(2, 2), padding=((1, 1), (1, 1)),
            dimension_numbers=("NCHW", "OIHW", "NCHW"))
        return lrelu(y + b.reshape(1, -1, 1, 1))

    h = conv(xb, raw["c1_w"], raw["c1_b"])
    h = conv(h, raw["c2_w"], raw["c2_b"])
    f = h.reshape(h.shape[0], -1)                       # torch.flatten (NCHW order)
    h = lrelu(f @ raw["fc1_w"] + raw["fc1_b"])
    h = lrelu(h @ raw["fc2_w"] + raw["fc2_b"])
    y = h @ raw["fc3_w"] + raw["fc3_b"]
    logp = jax.nn.log_softmax(y, axis=-1)
    return logp.reshape(B, Pn, -1).transpose(1, 0, 2)


# ------------------------------------- main -------------------------------------

if __name__ == "__main__":
    # cfg: len(cfg.windows)=4 (input channels), cfg.height=16 (square), cls_num=10
    B, Pn, C, H, W = 2, 3, 4, 16, 16
    cls_num = 10

    key = jax.random.PRNGKey(0)
    kx, kp = jax.random.split(key)
    x = jax.random.normal(kx, (B, Pn, C, H, W), dtype=jnp.float32)
    params, raw = init_params(kp, cin=C, height=H, cls_num=cls_num)

    fwd = jax.jit(lambda xx: sccm_forward(xx, params))
    result = fwd(x)                         # (Pn, B, cls_num+1) log-probs
    jax.block_until_ready(result)

    assert result.shape == (Pn, B, cls_num + 1)
    assert bool(jnp.all(jnp.isfinite(result)))

    # Validate the fused kernel (incl. the dense conv lowering) against a
    # pure-JAX NCHW reference that uses the same bf16-rounded weights; remaining
    # differences are only from in-kernel bf16 activation casts.
    ref = reference_forward(x, raw)
    assert bool(jnp.allclose(result, ref, atol=5e-2, rtol=1e-2))

    # eval-mode path: decode on host (data-dependent Python loop, no Pallas equiv)
    seqs = decode(result)
    assert len(seqs) == B

    print("KERNEL_OK")
</pallas_src>

<mosaic_0001>
module attributes {stable_mosaic.version = 11 : i64} {
  func.func @_sccm_fused_kernel(%arg0: i32, %arg1: memref<6x1024xf32, #tpu.memory_space<vmem>>, %arg2: memref<1024x512xbf16, #tpu.memory_space<vmem>>, %arg3: memref<1x512xf32, #tpu.memory_space<vmem>>, %arg4: memref<512x256xbf16, #tpu.memory_space<vmem>>, %arg5: memref<1x256xf32, #tpu.memory_space<vmem>>, %arg6: memref<256x900xbf16, #tpu.memory_space<vmem>>, %arg7: memref<1x900xf32, #tpu.memory_space<vmem>>, %arg8: memref<900x200xbf16, #tpu.memory_space<vmem>>, %arg9: memref<1x200xf32, #tpu.memory_space<vmem>>, %arg10: memref<200x11xbf16, #tpu.memory_space<vmem>>, %arg11: memref<1x11xf32, #tpu.memory_space<vmem>>, %arg12: memref<6x11xf32, #tpu.memory_space<vmem>>) attributes {dimension_semantics = [#tpu.dimension_semantics<arbitrary>], iteration_bounds = array<i64: 1>, scalar_prefetch = 0 : i64, scratch_operands = 0 : i64, tpu.core_type = #tpu.core_type<tc>, window_params = [{transform_indices = @transform_0, window_bounds = array<i64: 6, 1024>}, {pipeline_mode = #tpu.pipeline_mode<synchronous>, transform_indices = @transform_1, window_bounds = array<i64: 1024, 512>}, {pipeline_mode = #tpu.pipeline_mode<synchronous>, transform_indices = @transform_2, window_bounds = array<i64: 1, 512>}, {pipeline_mode = #tpu.pipeline_mode<synchronous>, transform_indices = @transform_3, window_bounds = array<i64: 512, 256>}, {pipeline_mode = #tpu.pipeline_mode<synchronous>, transform_indices = @transform_4, window_bounds = array<i64: 1, 256>}, {pipeline_mode = #tpu.pipeline_mode<synchronous>, transform_indices = @transform_5, window_bounds = array<i64: 256, 900>}, {pipeline_mode = #tpu.pipeline_mode<synchronous>, transform_indices = @transform_6, window_bounds = array<i64: 1, 900>}, {pipeline_mode = #tpu.pipeline_mode<synchronous>, transform_indices = @transform_7, window_bounds = array<i64: 900, 200>}, {pipeline_mode = #tpu.pipeline_mode<synchronous>, transform_indices = @transform_8, window_bounds = array<i64: 1, 200>}, {pipeline_mode = #tpu.pipeline_mode<synchronous>, transform_indices = @transform_9, window_bounds = array<i64: 200, 11>}, {pipeline_mode = #tpu.pipeline_mode<synchronous>, transform_indices = @transform_10, window_bounds = array<i64: 1, 11>}, {transform_indices = @transform_11, window_bounds = array<i64: 6, 11>}]} {
    %c0 = arith.constant 0 : index
    %c0_0 = arith.constant 0 : index
    %0 = vector.load %arg1[%c0, %c0_0] : memref<6x1024xf32, #tpu.memory_space<vmem>>, vector<6x1024xf32>
    %1 = arith.truncf %0 : vector<6x1024xf32> to vector<6x1024xbf16>
    %c0_1 = arith.constant 0 : index
    %c0_2 = arith.constant 0 : index
    %2 = vector.load %arg2[%c0_1, %c0_2] : memref<1024x512xbf16, #tpu.memory_space<vmem>>, vector<1024x512xbf16>
    %cst = arith.constant dense<0.000000e+00> : vector<6x512xf32>
    %3 = tpu.matmul %1, %2, %cst {dimension_numbers = #tpu.dot_dimension_numbers<[1], [0], [0], [1], [0, 0, 1, 1], [], []>} : vector<6x1024xbf16>, vector<1024x512xbf16>, vector<6x512xf32> -> vector<6x512xf32>
    %c0_3 = arith.constant 0 : index
    %c0_4 = arith.constant 0 : index
    %4 = vector.load %arg3[%c0_3, %c0_4] : memref<1x512xf32, #tpu.memory_space<vmem>>, vector<1x512xf32>
    %5 = vector.broadcast %4 : vector<1x512xf32> to vector<6x512xf32>
    %6 = arith.addf %3, %5 : vector<6x512xf32>
    %cst_5 = arith.constant 0.000000e+00 : f32
    %7 = vector.broadcast %cst_5 : f32 to vector<6x512xf32>
    %8 = arith.cmpf oge, %6, %7 : vector<6x512xf32>
    %cst_6 = arith.constant 0.00999999977 : f32
    %9 = vector.broadcast %cst_6 : f32 to vector<6x512xf32>
    %10 = arith.mulf %9, %6 : vector<6x512xf32>
    %11 = arith.select %8, %6, %10 : vector<6x512xi1>, vector<6x512xf32>
    %12 = arith.truncf %11 : vector<6x512xf32> to vector<6x512xbf16>
    %c0_7 = arith.constant 0 : index
    %c0_8 = arith.constant 0 : index
    %13 = vector.load %arg4[%c0_7, %c0_8] : memref<512x256xbf16, #tpu.memory_space<vmem>>, vector<512x256xbf16>
    %cst_9 = arith.constant dense<0.000000e+00> : vector<6x256xf32>
    %14 = tpu.matmul %12, %13, %cst_9 {dimension_numbers = #tpu.dot_dimension_numbers<[1], [0], [0], [1], [0, 0, 1, 1], [], []>} : vector<6x512xbf16>, vector<512x256xbf16>, vector<6x256xf32> -> vector<6x256xf32>
    %c0_10 = arith.constant 0 : index
    %c0_11 = arith.constant 0 : index
    %15 = vector.load %arg5[%c0_10, %c0_11] : memref<1x256xf32, #tpu.memory_space<vmem>>, vector<1x256xf32>
    %16 = vector.broadcast %15 : vector<1x256xf32> to vector<6x256xf32>
    %17 = arith.addf %14, %16 : vector<6x256xf32>
    %cst_12 = arith.constant 0.000000e+00 : f32
    %18 = vector.broadcast %cst_12 : f32 to vector<6x256xf32>
    %19 = arith.cmpf oge, %17, %18 : vector<6x256xf32>
    %cst_13 = arith.constant 0.00999999977 : f32
    %20 = vector.broadcast %cst_13 : f32 to vector<6x256xf32>
    %21 = arith.mulf %20, %17 : vector<6x256xf32>
    %22 = arith.select %19, %17, %21 : vector<6x256xi1>, vector<6x256xf32>
    %23 = arith.truncf %22 : vector<6x256xf32> to vector<6x256xbf16>
    %c0_14 = arith.constant 0 : index
    %c0_15 = arith.constant 0 : index
    %24 = vector.load %arg6[%c0_14, %c0_15] : memref<256x900xbf16, #tpu.memory_space<vmem>>, vector<256x900xbf16>
    %cst_16 = arith.constant dense<0.000000e+00> : vector<6x900xf32>
    %25 = tpu.matmul %23, %24, %cst_16 {dimension_numbers = #tpu.dot_dimension_numbers<[1], [0], [0], [1], [0, 0, 1, 1], [], []>} : vector<6x256xbf16>, vector<256x900xbf16>, vector<6x900xf32> -> vector<6x900xf32>
    %c0_17 = arith.constant 0 : index
    %c0_18 = arith.constant 0 : index
    %26 = vector.load %arg7[%c0_17, %c0_18] : memref<1x900xf32, #tpu.memory_space<vmem>>, vector<1x900xf32>
    %27 = vector.broadcast %26 : vector<1x900xf32> to vector<6x900xf32>
    %28 = arith.addf %25, %27 : vector<6x900xf32>
    %cst_19 = arith.constant 0.000000e+00 : f32
    %29 = vector.broadcast %cst_19 : f32 to vector<6x900xf32>
    %30 = arith.cmpf oge, %28, %29 : vector<6x900xf32>
    %cst_20 = arith.constant 0.00999999977 : f32
    %31 = vector.broadcast %cst_20 : f32 to vector<6x900xf32>
    %32 = arith.mulf %31, %28 : vector<6x900xf32>
    %33 = arith.select %30, %28, %32 : vector<6x900xi1>, vector<6x900xf32>
    %34 = arith.truncf %33 : vector<6x900xf32> to vector<6x900xbf16>
    %c0_21 = arith.constant 0 : index
    %c0_22 = arith.constant 0 : index
    %35 = vector.load %arg8[%c0_21, %c0_22] : memref<900x200xbf16, #tpu.memory_space<vmem>>, vector<900x200xbf16>
    %cst_23 = arith.constant dense<0.000000e+00> : vector<6x200xf32>
    %36 = tpu.matmul %34, %35, %cst_23 {dimension_numbers = #tpu.dot_dimension_numbers<[1], [0], [0], [1], [0, 0, 1, 1], [], []>} : vector<6x900xbf16>, vector<900x200xbf16>, vector<6x200xf32> -> vector<6x200xf32>
    %c0_24 = arith.constant 0 : index
    %c0_25 = arith.constant 0 : index
    %37 = vector.load %arg9[%c0_24, %c0_25] : memref<1x200xf32, #tpu.memory_space<vmem>>, vector<1x200xf32>
    %38 = vector.broadcast %37 : vector<1x200xf32> to vector<6x200xf32>
    %39 = arith.addf %36, %38 : vector<6x200xf32>
    %cst_26 = arith.constant 0.000000e+00 : f32
    %40 = vector.broadcast %cst_26 : f32 to vector<6x200xf32>
    %41 = arith.cmpf oge, %39, %40 : vector<6x200xf32>
    %cst_27 = arith.constant 0.00999999977 : f32
    %42 = vector.broadcast %cst_27 : f32 to vector<6x200xf32>
    %43 = arith.mulf %42, %39 : vector<6x200xf32>
    %44 = arith.select %41, %39, %43 : vector<6x200xi1>, vector<6x200xf32>
    %45 = arith.truncf %44 : vector<6x200xf32> to vector<6x200xbf16>
    %c0_28 = arith.constant 0 : index
    %c0_29 = arith.constant 0 : index
    %46 = vector.load %arg10[%c0_28, %c0_29] : memref<200x11xbf16, #tpu.memory_space<vmem>>, vector<200x11xbf16>
    %cst_30 = arith.constant dense<0.000000e+00> : vector<6x11xf32>
    %47 = tpu.matmul %45, %46, %cst_30 {dimension_numbers = #tpu.dot_dimension_numbers<[1], [0], [0], [1], [0, 0, 1, 1], [], []>} : vector<6x200xbf16>, vector<200x11xbf16>, vector<6x11xf32> -> vector<6x11xf32>
    %c0_31 = arith.constant 0 : index
    %c0_32 = arith.constant 0 : index
    %48 = vector.load %arg11[%c0_31, %c0_32] : memref<1x11xf32, #tpu.memory_space<vmem>>, vector<1x11xf32>
    %49 = vector.broadcast %48 : vector<1x11xf32> to vector<6x11xf32>
    %50 = arith.addf %47, %49 : vector<6x11xf32>
    %cst_33 = arith.constant dense<0xFF800000> : vector<6xf32>
    %51 = vector.multi_reduction <maximumf>, %50, %cst_33 [1] : vector<6x11xf32> to vector<6xf32>
    %52 = vector.shape_cast %51 : vector<6xf32> to vector<6x1xf32>
    %53 = vector.broadcast %52 : vector<6x1xf32> to vector<6x11xf32>
    %54 = arith.subf %50, %53 : vector<6x11xf32>
    %55 = math.exp %54 : vector<6x11xf32>
    %cst_34 = arith.constant dense<0.000000e+00> : vector<6xf32>
    %56 = vector.multi_reduction <add>, %55, %cst_34 [1] : vector<6x11xf32> to vector<6xf32>
    %57 = vector.shape_cast %56 : vector<6xf32> to vector<6x1xf32>
    %58 = math.log %57 : vector<6x1xf32>
    %59 = vector.broadcast %58 : vector<6x1xf32> to vector<6x11xf32>
    %60 = arith.subf %54, %59 : vector<6x11xf32>
    %c0_35 = arith.constant 0 : index
    %c0_36 = arith.constant 0 : index
    %61 = vector.load %arg12[%c0_35, %c0_36] : memref<6x11xf32, #tpu.memory_space<vmem>>, vector<6x11xf32>
    tpu.vector_store %arg12[%c0_35, %c0_36], %60 {strides = array<i32>} : memref<6x11xf32, #tpu.memory_space<vmem>>, vector<6x11xf32>,
    return
  }
  func.func @transform_0(%arg0: i32) -> (i32, i32) {
    %c0_i32 = arith.constant 0 : i32
    %c0_i32_0 = arith.constant 0 : i32
    return %arg0, %c0_i32 : i32, i32
  }
  func.func @transform_1(%arg0: i32) -> (i32, i32) {
    %c0_i32 = arith.constant 0 : i32
    %c0_i32_0 = arith.constant 0 : i32
    %c0_i32_1 = arith.constant 0 : i32
    return %c0_i32, %c0_i32_0 : i32, i32
  }
  func.func @transform_2(%arg0: i32) -> (i32, i32) {
    %c0_i32 = arith.constant 0 : i32
    %c0_i32_0 = arith.constant 0 : i32
    %c0_i32_1 = arith.constant 0 : i32
    return %c0_i32, %c0_i32_0 : i32, i32
  }
  func.func @transform_3(%arg0: i32) -> (i32, i32) {
    %c0_i32 = arith.constant 0 : i32
    %c0_i32_0 = arith.constant 0 : i32
    %c0_i32_1 = arith.constant 0 : i32
    return %c0_i32, %c0_i32_0 : i32, i32
  }
  func.func @transform_4(%arg0: i32) -> (i32, i32) {
    %c0_i32 = arith.constant 0 : i32
    %c0_i32_0 = arith.constant 0 : i32
    %c0_i32_1 = arith.constant 0 : i32
    return %c0_i32, %c0_i32_0 : i32, i32
  }
  func.func @transform_5(%arg0: i32) -> (i32, i32) {
    %c0_i32 = arith.constant 0 : i32
    %c0_i32_0 = arith.constant 0 : i32
    %c0_i32_1 = arith.constant 0 : i32
    return %c0_i32, %c0_i32_0 : i32, i32
  }
  func.func @transform_6(%arg0: i32) -> (i32, i32) {
    %c0_i32 = arith.constant 0 : i32
    %c0_i32_0 = arith.constant 0 : i32
    %c0_i32_1 = arith.constant 0 : i32
    return %c0_i32, %c0_i32_0 : i32, i32
  }
  func.func @transform_7(%arg0: i32) -> (i32, i32) {
    %c0_i32 = arith.constant 0 : i32
    %c0_i32_0 = arith.constant 0 : i32
    %c0_i32_1 = arith.constant 0 : i32
    return %c0_i32, %c0_i32_0 : i32, i32
  }
  func.func @transform_8(%arg0: i32) -> (i32, i32) {
    %c0_i32 = arith.constant 0 : i32
    %c0_i32_0 = arith.constant 0 : i32
    %c0_i32_1 = arith.constant 0 : i32
    return %c0_i32, %c0_i32_0 : i32, i32
  }
  func.func @transform_9(%arg0: i32) -> (i32, i32) {
    %c0_i32 = arith.constant 0 : i32
    %c0_i32_0 = arith.constant 0 : i32
    %c0_i32_1 = arith.constant 0 : i32
    return %c0_i32, %c0_i32_0 : i32, i32
  }
  func.func @transform_10(%arg0: i32) -> (i32, i32) {
    %c0_i32 = arith.constant 0 : i32
    %c0_i32_0 = arith.constant 0 : i32
    %c0_i32_1 = arith.constant 0 : i32
    return %c0_i32, %c0_i32_0 : i32, i32
  }
  func.func @transform_11(%arg0: i32) -> (i32, i32) {
    %c0_i32 = arith.constant 0 : i32
    %c0_i32_0 = arith.constant 0 : i32
    return %arg0, %c0_i32 : i32, i32
  }
}

</mosaic_0001>

<bundles_post_ra>
// kernel: _lambda_.1
= control target key start
LH: loop header
LB: loop body
LE: loop exit
PB: predicated region body
PF: predicated region fallthrough
CT: control target
= control target key end

     0   :  { %vm4143_vm8 = vcmask 1041408   ;;  %vm4139_vm15 = vcmask 31744   ;;  %s7737_s1 = inlined_call_operand.vmem [shape: bf16[1024,512], index: 1, kind: input, shape index: {}]   ;;  %s7738_s0 = inlined_call_operand.vmem [shape: f32[6,1024], index: 0, kind: input, shape index: {}]   ;;  %s7739_s3 = inlined_call_operand.vmem [shape: bf16[512,256], index: 3, kind: input, shape index: {}]   ;;  %s7740_s2 = inlined_call_operand.vmem [shape: f32[1,512], index: 2, kind: input, shape index: {}]   ;;  %s7741_s5 = inlined_call_operand.vmem [shape: bf16[256,900], index: 5, kind: input, shape index: {}]   ;;  %s7742_s4 = inlined_call_operand.vmem [shape: f32[1,256], index: 4, kind: input, shape index: {}]   ;;  %s7743_s7 = inlined_call_operand.vmem [shape: bf16[900,200], index: 7, kind: input, shape index: {}]   ;;  %s7744_s6 = inlined_call_operand.vmem [shape: f32[1,900], index: 6, kind: input, shape index: {}]   ;;  %s7745_s9 = inlined_call_operand.vmem [shape: bf16[200,11], index: 9, kind: input, shape index: {}]   ;;  %s7746_s8 = inlined_call_operand.vmem [shape: f32[1,200], index: 8, kind: input, shape index: {}]   ;;  %s7747_s10 = inlined_call_operand.vmem [shape: f32[1,11], index: 10, kind: input, shape index: {}]   ;;  %s7748_s11 = inlined_call_operand.vmem [shape: f32[6,11], index: 11, kind: output, shape index: {}]  }
   0x1   :  { %v5119_v0 = vld [vmem:[%s7737_s1 + $0x4] ss:$16 sps:$4 sm:$0xff]   ;;  %v5123_v2 = vld [vmem:[%s7737_s1] ss:$16 sps:$4 sm:$0xff]   ;;  %v40_v46 = vld [vmem:[%s7738_s0 + $0x8] sm:$0x3f] }
   0x2   :  { %v5121_v1 = vld [vmem:[%s7737_s1 + $0x204] ss:$16 sps:$4 sm:$0xff]   ;;  %1613 = vmatprep.subr.bf16.mxu1 %v5119_v0  ;;  %v5124_v3 = vld [vmem:[%s7737_s1 + $0x200] ss:$16 sps:$4 sm:$0xff]   ;;  %v5991_v48 = vpack.c.bf16 %v40_v46, %v40_v46  ;;  %v42_v49 = vld [vmem:[%s7738_s0 + $0x18] sm:$0x3f] }
   0x3   :  { %1654 = vmatprep.subr.bf16.mxu0 %v5121_v1  ;;  %v5125_v4 = vld [vmem:[%s7737_s1 + $0x24] ss:$16 sps:$4 sm:$0xff]   ;;  %1614 = vmatpush1.bf16.msra.mxu1 %v5123_v2  ;;  %v5129_v6 = vld [vmem:[%s7737_s1 + $0x20] ss:$16 sps:$4 sm:$0xff]   ;;  %v6002_v52 = vpack.c.bf16 %v42_v49, %v42_v49  ;;  %v5272_v49 = vld [vmem:[%s7737_s1 + $0x128] ss:$16 sps:$4 sm:$0xff]  }
   0x4   :  { %1655 = vmatpush1.bf16.msra.mxu0 %v5124_v3  ;;  %v5127_v5 = vld [vmem:[%s7737_s1 + $0x224] ss:$16 sps:$4 sm:$0xff]   ;;  %1615 = vmatprep.subr.bf16.mxu1 %v5125_v4  ;;  %v5130_v7 = vld [vmem:[%s7737_s1 + $0x220] ss:$16 sps:$4 sm:$0xff]  }
   0x5   :  { %1656 = vmatprep.subr.bf16.mxu0 %v5127_v5  ;;  %v5131_v8 = vld [vmem:[%s7737_s1 + $0x44] ss:$16 sps:$4 sm:$0xff]   ;;  %v5135_v10 = vld [vmem:[%s7737_s1 + $0x40] ss:$16 sps:$4 sm:$0xff]   ;;  %1645 = vmatprep.mubr.bf16.mxu1 %v5991_v48 }
   0x6   :  { %v5133_v9 = vld [vmem:[%s7737_s1 + $0x244] ss:$16 sps:$4 sm:$0xff]   ;;  %v5136_v11 = vld [vmem:[%s7737_s1 + $0x240] ss:$16 sps:$4 sm:$0xff]   ;;  %1686 = vmatprep.mubr.bf16.mxu0 %v6002_v52 }
   0x7   :  { %1616 = vmatpush1.bf16.msra.mxu1 %v5129_v6  ;;  %v5137_v12 = vld [vmem:[%s7737_s1 + $0x64] ss:$16 sps:$4 sm:$0xff]   ;;  %v5141_v14 = vld [vmem:[%s7737_s1 + $0x60] ss:$16 sps:$4 sm:$0xff]  }
   0x8   :  { %1657 = vmatpush1.bf16.msra.mxu0 %v5130_v7  ;;  %1617 = vmatprep.subr.bf16.mxu1 %v5131_v8  ;;  %v5139_v13 = vld [vmem:[%s7737_s1 + $0x264] ss:$16 sps:$4 sm:$0xff]   ;;  %v5142_v15 = vld [vmem:[%s7737_s1 + $0x260] ss:$16 sps:$4 sm:$0xff]   ;;  %v5220_v7 = vld [vmem:[%s7737_s1 + $0xc] ss:$16 sps:$4 sm:$0xff]  }
   0x9   :  { %1658 = vmatprep.subr.bf16.mxu0 %v5133_v9  ;;  %v5143_v16 = vld [vmem:[%s7737_s1 + $0x84] ss:$16 sps:$4 sm:$0xff]   ;;  %v5147_v18 = vld [vmem:[%s7737_s1 + $0x80] ss:$16 sps:$4 sm:$0xff]  }
   0xa   :  { %v5145_v17 = vld [vmem:[%s7737_s1 + $0x284] ss:$16 sps:$4 sm:$0xff]   ;;  %v5148_v19 = vld [vmem:[%s7737_s1 + $0x280] ss:$16 sps:$4 sm:$0xff]  }
   0xb   :  { %1618 = vmatpush1.bf16.msra.mxu1 %v5135_v10  ;;  %v5149_v20 = vld [vmem:[%s7737_s1 + $0xa4] ss:$16 sps:$4 sm:$0xff]   ;;  %v5153_v22 = vld [vmem:[%s7737_s1 + $0xa0] ss:$16 sps:$4 sm:$0xff]   ;;  %v5218_v10 = vld [vmem:[%s7737_s1 + $0x8] ss:$16 sps:$4 sm:$0xff]  }
   0xc   :  { %1659 = vmatpush1.bf16.msra.mxu0 %v5136_v11  ;;  %1619 = vmatprep.subr.bf16.mxu1 %v5137_v12  ;;  %v5151_v21 = vld [vmem:[%s7737_s1 + $0x2a4] ss:$16 sps:$4 sm:$0xff]   ;;  %v5154_v23 = vld [vmem:[%s7737_s1 + $0x2a0] ss:$16 sps:$4 sm:$0xff]  }
   0xd   :  { %1660 = vmatprep.subr.bf16.mxu0 %v5139_v13  ;;  %v5155_v24 = vld [vmem:[%s7737_s1 + $0xc4] ss:$16 sps:$4 sm:$0xff]   ;;  %v5159_v26 = vld [vmem:[%s7737_s1 + $0xc0] ss:$16 sps:$4 sm:$0xff]   ;;  %v5226_v13 = vld [vmem:[%s7737_s1 + $0x2c] ss:$16 sps:$4 sm:$0xff]  }
   0xe   :  { %v5157_v25 = vld [vmem:[%s7737_s1 + $0x2c4] ss:$16 sps:$4 sm:$0xff]   ;;  %v5160_v27 = vld [vmem:[%s7737_s1 + $0x2c0] ss:$16 sps:$4 sm:$0xff]  }
   0xf   :  { %1620 = vmatpush1.bf16.msra.mxu1 %v5141_v14  ;;  %v5161_v28 = vld [vmem:[%s7737_s1 + $0xe4] ss:$16 sps:$4 sm:$0xff]   ;;  %v5165_v30 = vld [vmem:[%s7737_s1 + $0xe0] ss:$16 sps:$4 sm:$0xff]  }
  0x10   :  { %1661 = vmatpush1.bf16.msra.mxu0 %v5142_v15  ;;  %1621 = vmatprep.subr.bf16.mxu1 %v5143_v16  ;;  %v5163_v29 = vld [vmem:[%s7737_s1 + $0x2e4] ss:$16 sps:$4 sm:$0xff]   ;;  %v5166_v31 = vld [vmem:[%s7737_s1 + $0x2e0] ss:$16 sps:$4 sm:$0xff]   ;;  %v5224_v15 = vld [vmem:[%s7737_s1 + $0x28] ss:$16 sps:$4 sm:$0xff]  }
  0x11   :  { %1662 = vmatprep.subr.bf16.mxu0 %v5145_v17  ;;  %v5167_v32 = vld [vmem:[%s7737_s1 + $0x104] ss:$16 sps:$4 sm:$0xff]   ;;  %v5171_v34 = vld [vmem:[%s7737_s1 + $0x100] ss:$16 sps:$4 sm:$0xff]   ;;  %v5232_v17 = vld [vmem:[%s7737_s1 + $0x4c] ss:$16 sps:$4 sm:$0xff]  }
  0x12   :  { %v5169_v33 = vld [vmem:[%s7737_s1 + $0x304] ss:$16 sps:$4 sm:$0xff]   ;;  %v5172_v35 = vld [vmem:[%s7737_s1 + $0x300] ss:$16 sps:$4 sm:$0xff]  }
  0x13   :  { %1622 = vmatpush1.bf16.msra.mxu1 %v5147_v18  ;;  %v5173_v36 = vld [vmem:[%s7737_s1 + $0x124] ss:$16 sps:$4 sm:$0xff]   ;;  %v5177_v38 = vld [vmem:[%s7737_s1 + $0x120] ss:$16 sps:$4 sm:$0xff]  }
  0x14   :  { %1663 = vmatpush1.bf16.msra.mxu0 %v5148_v19  ;;  %1623 = vmatprep.subr.bf16.mxu1 %v5149_v20  ;;  %v5175_v37 = vld [vmem:[%s7737_s1 + $0x324] ss:$16 sps:$4 sm:$0xff]   ;;  %v5178_v39 = vld [vmem:[%s7737_s1 + $0x320] ss:$16 sps:$4 sm:$0xff]   ;;  %v5230_v19 = vld [vmem:[%s7737_s1 + $0x48] ss:$16 sps:$4 sm:$0xff]  }
  0x15   :  { %1664 = vmatprep.subr.bf16.mxu0 %v5151_v21  ;;  %v5179_v40 = vld [vmem:[%s7737_s1 + $0x144] ss:$16 sps:$4 sm:$0xff]   ;;  %v5183_v42 = vld [vmem:[%s7737_s1 + $0x140] ss:$16 sps:$4 sm:$0xff]   ;;  %v5238_v21 = vld [vmem:[%s7737_s1 + $0x6c] ss:$16 sps:$4 sm:$0xff]  }
  0x16   :  { %v5181_v41 = vld [vmem:[%s7737_s1 + $0x344] ss:$16 sps:$4 sm:$0xff]   ;;  %v5184_v43 = vld [vmem:[%s7737_s1 + $0x340] ss:$16 sps:$4 sm:$0xff]  }
  0x17   :  { %1624 = vmatpush1.bf16.msra.mxu1 %v5153_v22  ;;  %v5185_v44 = vld [vmem:[%s7737_s1 + $0x164] ss:$16 sps:$4 sm:$0xff]   ;;  %v5189_v47 = vld [vmem:[%s7737_s1 + $0x160] ss:$16 sps:$4 sm:$0xff]  }
  0x18   :  { %1665 = vmatpush1.bf16.msra.mxu0 %v5154_v23  ;;  %1625 = vmatprep.subr.bf16.mxu1 %v5155_v24  ;;  %v5187_v45 = vld [vmem:[%s7737_s1 + $0x364] ss:$16 sps:$4 sm:$0xff]   ;;  %v5190_v50 = vld [vmem:[%s7737_s1 + $0x360] ss:$16 sps:$4 sm:$0xff]   ;;  %v5236_v23 = vld [vmem:[%s7737_s1 + $0x68] ss:$16 sps:$4 sm:$0xff]  }
  0x19   :  { %1666 = vmatprep.subr.bf16.mxu0 %v5157_v25  ;;  %v5191_v51 = vld [vmem:[%s7737_s1 + $0x184] ss:$16 sps:$4 sm:$0xff]   ;;  %v5195_v54 = vld [vmem:[%s7737_s1 + $0x180] ss:$16 sps:$4 sm:$0xff]   ;;  %v5244_v25 = vld [vmem:[%s7737_s1 + $0x8c] ss:$16 sps:$4 sm:$0xff]  }
  0x1a   :  { %v5193_v53 = vld [vmem:[%s7737_s1 + $0x384] ss:$16 sps:$4 sm:$0xff]   ;;  %v5196_v55 = vld [vmem:[%s7737_s1 + $0x380] ss:$16 sps:$4 sm:$0xff]  }
  0x1b   :  { %1626 = vmatpush1.bf16.msra.mxu1 %v5159_v26  ;;  %v5197_v56 = vld [vmem:[%s7737_s1 + $0x1a4] ss:$16 sps:$4 sm:$0xff]   ;;  %v5201_v58 = vld [vmem:[%s7737_s1 + $0x1a0] ss:$16 sps:$4 sm:$0xff]  }
  0x1c   :  { %1667 = vmatpush1.bf16.msra.mxu0 %v5160_v27  ;;  %1627 = vmatprep.subr.bf16.mxu1 %v5161_v28  ;;  %v5199_v57 = vld [vmem:[%s7737_s1 + $0x3a4] ss:$16 sps:$4 sm:$0xff]   ;;  %v5202_v59 = vld [vmem:[%s7737_s1 + $0x3a0] ss:$16 sps:$4 sm:$0xff]   ;;  %v5242_v27 = vld [vmem:[%s7737_s1 + $0x88] ss:$16 sps:$4 sm:$0xff]  }
  0x1d   :  { %1668 = vmatprep.subr.bf16.mxu0 %v5163_v29  ;;  %v5203_v60 = vld [vmem:[%s7737_s1 + $0x1c4] ss:$16 sps:$4 sm:$0xff]   ;;  %v5207_v62 = vld [vmem:[%s7737_s1 + $0x1c0] ss:$16 sps:$4 sm:$0xff]   ;;  %v5250_v29 = vld [vmem:[%s7737_s1 + $0xac] ss:$16 sps:$4 sm:$0xff]  }
  0x1e   :  { %v5205_v61 = vld [vmem:[%s7737_s1 + $0x3c4] ss:$16 sps:$4 sm:$0xff]   ;;  %v5208_v63 = vld [vmem:[%s7737_s1 + $0x3c0] ss:$16 sps:$4 sm:$0xff]  }
  0x1f   :  { %1628 = vmatpush1.bf16.msra.mxu1 %v5165_v30  ;;  %v5209_v0 = vld [vmem:[%s7737_s1 + $0x1e4] ss:$16 sps:$4 sm:$0xff]   ;;  %v5213_v2 = vld [vmem:[%s7737_s1 + $0x1e0] ss:$16 sps:$4 sm:$0xff]  }
  0x20   :  { %1669 = vmatpush1.bf16.msra.mxu0 %v5166_v31  ;;  %1629 = vmatprep.subr.bf16.mxu1 %v5167_v32  ;;  %v5211_v1 = vld [vmem:[%s7737_s1 + $0x3e4] ss:$16 sps:$4 sm:$0xff]   ;;  %v5214_v3 = vld [vmem:[%s7737_s1 + $0x3e0] ss:$16 sps:$4 sm:$0xff]   ;;  %v5248_v31 = vld [vmem:[%s7737_s1 + $0xa8] ss:$16 sps:$4 sm:$0xff]  }
  0x21   :  { %1670 = vmatprep.subr.bf16.mxu0 %v5169_v33  ;;  %v39_v4 = vld [vmem:[%s7738_s0] sm:$0x3f]  ;;  %v41_v6 = vld [vmem:[%s7738_s0 + $0x10] sm:$0x3f]  ;;  %v5256_v33 = vld [vmem:[%s7737_s1 + $0xcc] ss:$16 sps:$4 sm:$0xff]  }
  0x22   :  { %v5217_v5 = vld [vmem:[%s7737_s1 + $0x404] ss:$16 sps:$4 sm:$0xff]   ;;  %v6063_v8 = vpack.c.bf16 %v39_v4, %v39_v4  ;;  %v5215_v9 = vld [vmem:[%s7737_s1 + $0x400] ss:$16 sps:$4 sm:$0xff]   ;;  %v6071_v11 = vpack.c.bf16 %v41_v6, %v41_v6  ;;  %v5304_v4 = vld [vmem:[%s7737_s1 + $0x1cc] ss:$16 sps:$4 sm:$0xff]  }
  0x23   :  { %1630 = vmatpush1.bf16.msra.mxu1 %v5171_v34  ;;  %v5223_v12 = vld [vmem:[%s7737_s1 + $0x424] ss:$16 sps:$4 sm:$0xff]   ;;  %v5221_v14 = vld [vmem:[%s7737_s1 + $0x420] ss:$16 sps:$4 sm:$0xff]   ;;  %v44_v34 = vld [vmem:[%s7738_s0 + $0x28] sm:$0x3f] }
  0x24   :  { %1671 = vmatpush1.bf16.msra.mxu0 %v5172_v35  ;;  %1631 = vmatprep.subr.bf16.mxu1 %v5173_v36  ;;  %v5229_v16 = vld [vmem:[%s7737_s1 + $0x444] ss:$16 sps:$4 sm:$0xff]   ;;  %v5227_v18 = vld [vmem:[%s7737_s1 + $0x440] ss:$16 sps:$4 sm:$0xff]   ;;  %v6148_v36 = vpack.c.bf16 %v44_v34, %v44_v34  ;;  %v5302_v6 = vld [vmem:[%s7737_s1 + $0x1c8] ss:$16 sps:$4 sm:$0xff]  }
  0x25   :  { %1672 = vmatprep.subr.bf16.mxu0 %v5175_v37  ;;  %v5235_v20 = vld [vmem:[%s7737_s1 + $0x464] ss:$16 sps:$4 sm:$0xff]   ;;  %v5233_v22 = vld [vmem:[%s7737_s1 + $0x460] ss:$16 sps:$4 sm:$0xff]   ;;  %v5254_v37 = vld [vmem:[%s7737_s1 + $0xc8] ss:$16 sps:$4 sm:$0xff]  }
  0x26   :  { %v5241_v24 = vld [vmem:[%s7737_s1 + $0x484] ss:$16 sps:$4 sm:$0xff]   ;;  %v5239_v26 = vld [vmem:[%s7737_s1 + $0x480] ss:$16 sps:$4 sm:$0xff]   ;;  %v5338_v34 = vld [vmem:[%s7737_s1 + $0x288] ss:$16 sps:$4 sm:$0xff]  }
  0x27   :  { %1632 = vmatpush1.bf16.msra.mxu1 %v5177_v38  ;;  %v5247_v28 = vld [vmem:[%s7737_s1 + $0x4a4] ss:$16 sps:$4 sm:$0xff]   ;;  %v5245_v30 = vld [vmem:[%s7737_s1 + $0x4a0] ss:$16 sps:$4 sm:$0xff]  }
  0x28   :  { %1673 = vmatpush1.bf16.msra.mxu0 %v5178_v39  ;;  %1633 = vmatprep.subr.bf16.mxu1 %v5179_v40  ;;  %v5253_v32 = vld [vmem:[%s7737_s1 + $0x4c4] ss:$16 sps:$4 sm:$0xff]   ;;  %v5251_v35 = vld [vmem:[%s7737_s1 + $0x4c0] ss:$16 sps:$4 sm:$0xff]   ;;  %v5262_v39 = vld [vmem:[%s7737_s1 + $0xec] ss:$16 sps:$4 sm:$0xff]  }
  0x29   :  { %1674 = vmatprep.subr.bf16.mxu0 %v5181_v41  ;;  %v5259_v38 = vld [vmem:[%s7737_s1 + $0x4e4] ss:$16 sps:$4 sm:$0xff]   ;;  %v5257_v40 = vld [vmem:[%s7737_s1 + $0x4e0] ss:$16 sps:$4 sm:$0xff]   ;;  %v5260_v41 = vld [vmem:[%s7737_s1 + $0xe8] ss:$16 sps:$4 sm:$0xff]  }
  0x2a   :  { %v5271_v46 = vld [vmem:[%s7737_s1 + $0x524] ss:$16 sps:$4 sm:$0xff]  }
  0x2b   :  { %1634 = vmatpush1.bf16.msra.mxu1 %v5183_v42  ;;  %v5265_v42 = vld [vmem:[%s7737_s1 + $0x504] ss:$16 sps:$4 sm:$0xff]  }
  0x2c   :  { %1675 = vmatpush1.bf16.msra.mxu0 %v5184_v43  ;;  %1635 = vmatprep.subr.bf16.mxu1 %v5185_v44  ;;  %v5268_v43 = vld [vmem:[%s7737_s1 + $0x10c] ss:$16 sps:$4 sm:$0xff]   ;;  %v5263_v44 = vld [vmem:[%s7737_s1 + $0x500] ss:$16 sps:$4 sm:$0xff]  }
  0x2d   :  { %1676 = vmatprep.subr.bf16.mxu0 %v5187_v45  ;;  %v5266_v45 = vld [vmem:[%s7737_s1 + $0x108] ss:$16 sps:$4 sm:$0xff]  }
  0x2f   :  { %1636 = vmatpush1.bf16.msra.mxu1 %v5189_v47  ;;  %v5274_v47 = vld [vmem:[%s7737_s1 + $0x12c] ss:$16 sps:$4 sm:$0xff]  }
  0x30   :  { %1677 = vmatpush1.bf16.msra.mxu0 %v5190_v50  ;;  %1637 = vmatprep.subr.bf16.mxu1 %v5191_v51  ;;  %v5277_v50 = vld [vmem:[%s7737_s1 + $0x544] ss:$16 sps:$4 sm:$0xff]   ;;  %v5280_v51 = vld [vmem:[%s7737_s1 + $0x14c] ss:$16 sps:$4 sm:$0xff]  }
  0x31   :  { %1678 = vmatprep.subr.bf16.mxu0 %v5193_v53  ;;  %v5275_v53 = vld [vmem:[%s7737_s1 + $0x540] ss:$16 sps:$4 sm:$0xff]  }
  0x33   :  { %1638 = vmatpush1.bf16.msra.mxu1 %v5195_v54  ;;  %v5278_v54 = vld [vmem:[%s7737_s1 + $0x148] ss:$16 sps:$4 sm:$0xff]  }
  0x34   :  { %1679 = vmatpush1.bf16.msra.mxu0 %v5196_v55  ;;  %1639 = vmatprep.subr.bf16.mxu1 %v5197_v56  ;;  %v5283_v55 = vld [vmem:[%s7737_s1 + $0x564] ss:$16 sps:$4 sm:$0xff]   ;;  %v5286_v56 = vld [vmem:[%s7737_s1 + $0x16c] ss:$16 sps:$4 sm:$0xff]  }
  0x35   :  { %1680 = vmatprep.subr.bf16.mxu0 %v5199_v57  ;;  %v5281_v57 = vld [vmem:[%s7737_s1 + $0x560] ss:$16 sps:$4 sm:$0xff]  }
  0x37   :  { %1640 = vmatpush1.bf16.msra.mxu1 %v5201_v58  ;;  %v5284_v58 = vld [vmem:[%s7737_s1 + $0x168] ss:$16 sps:$4 sm:$0xff]  }
  0x38   :  { %1681 = vmatpush1.bf16.msra.mxu0 %v5202_v59  ;;  %1641 = vmatprep.subr.bf16.mxu1 %v5203_v60  ;;  %v5289_v59 = vld [vmem:[%s7737_s1 + $0x584] ss:$16 sps:$4 sm:$0xff]   ;;  %v5292_v60 = vld [vmem:[%s7737_s1 + $0x18c] ss:$16 sps:$4 sm:$0xff]  }
  0x39   :  { %1682 = vmatprep.subr.bf16.mxu0 %v5205_v61  ;;  %v5287_v61 = vld [vmem:[%s7737_s1 + $0x580] ss:$16 sps:$4 sm:$0xff]  }
  0x3b   :  { %1642 = vmatpush1.bf16.msra.mxu1 %v5207_v62  ;;  %v5290_v62 = vld [vmem:[%s7737_s1 + $0x188] ss:$16 sps:$4 sm:$0xff]  }
  0x3c   :  { %1683 = vmatpush1.bf16.msra.mxu0 %v5208_v63  ;;  %1643 = vmatprep.subr.bf16.mxu1 %v5209_v0  ;;  %v5295_v63 = vld [vmem:[%s7737_s1 + $0x5a4] ss:$16 sps:$4 sm:$0xff]   ;;  %v5298_v0 = vld [vmem:[%s7737_s1 + $0x1ac] ss:$16 sps:$4 sm:$0xff]  }
  0x3d   :  { %1684 = vmatprep.subr.bf16.mxu0 %v5211_v1  ;;  %v5293_v1 = vld [vmem:[%s7737_s1 + $0x5a0] ss:$16 sps:$4 sm:$0xff]  }
  0x3f   :  { %1644 = vmatpush1.bf16.msra.mxu1 %v5213_v2  ;;  %v5296_v2 = vld [vmem:[%s7737_s1 + $0x1a8] ss:$16 sps:$4 sm:$0xff]  }
  0x40   :  { %1685 = vmatpush1.bf16.msra.mxu0 %v5214_v3  ;;  %1777 = vmatprep.subr.bf16.mxu1 %v5220_v7  ;;  %v5301_v3 = vld [vmem:[%s7737_s1 + $0x5c4] ss:$16 sps:$4 sm:$0xff]  }
  0x41   :  { %1695 = vmatprep.subr.bf16.mxu0 %v5217_v5  ;;  %v5299_v5 = vld [vmem:[%s7737_s1 + $0x5c0] ss:$16 sps:$4 sm:$0xff]   ;;  %v5307_v7 = vld [vmem:[%s7737_s1 + $0x5e4] ss:$16 sps:$4 sm:$0xff]  }
  0x42   :  { %1646 = vmatmul.mubr.bf16.vlgmr.msra.gmra.mrb[0].mxu1 %v6063_v8 }
  0x43   :  { %1687 = vmatmul.mubr.bf16.vlgmr.msra.gmra.mrb[0].mxu0 %v6071_v11  ;;  %1778 = vmatpush1.bf16.msra.mxu1 %v5218_v10  ;;  %v5305_v10 = vld [vmem:[%s7737_s1 + $0x5e0] ss:$16 sps:$4 sm:$0xff]  }
  0x44   :  { %1696 = vmatpush1.bf16.msra.mxu0 %v5215_v9  ;;  %1779 = vmatprep.subr.bf16.mxu1 %v5226_v13  ;;  %v5310_v9 = vld [vmem:[%s7737_s1 + $0x1ec] ss:$16 sps:$4 sm:$0xff]   ;;  %v43_v13 = vld [vmem:[%s7738_s0 + $0x20] sm:$0x3f] }
  0x45   :  { %1697 = vmatprep.subr.bf16.mxu0 %v5223_v12  ;;  %1809 = vmatprep.mubr.bf16.mxu1 %v5991_v48  ;;  %v5269_v48 = vld [vmem:[%s7737_s1 + $0x520] ss:$16 sps:$4 sm:$0xff]   ;;  %v5308_v12 = vld [vmem:[%s7737_s1 + $0x1e8] ss:$16 sps:$4 sm:$0xff]  }
  0x46   :  { %1727 = vmatprep.mubr.bf16.mxu0 %v6148_v36 }
  0x47   :  { %1780 = vmatpush1.bf16.msra.mxu1 %v5224_v15  ;;  %v5316_v15 = vld [vmem:[%s7737_s1 + $0x20c] ss:$16 sps:$4 sm:$0xff]  }
  0x48   :  { %1698 = vmatpush1.bf16.msra.mxu0 %v5221_v14  ;;  %1781 = vmatprep.subr.bf16.mxu1 %v5232_v17  ;;  %v5313_v14 = vld [vmem:[%s7737_s1 + $0x604] ss:$16 sps:$4 sm:$0xff]   ;;  %v5311_v17 = vld [vmem:[%s7737_s1 + $0x600] ss:$16 sps:$4 sm:$0xff]  }
  0x49   :  { %1699 = vmatprep.subr.bf16.mxu0 %v5229_v16  ;;  %v6271_v16 = vpack.c.bf16 %v43_v13, %v43_v13  ;;  %v5395_v13 = vld [vmem:[%s7737_s1 + $0x7c0] ss:$16 sps:$4 sm:$0xff]  }
  0x4b   :  { %1782 = vmatpush1.bf16.msra.mxu1 %v5230_v19  ;;  %v5319_v19 = vld [vmem:[%s7737_s1 + $0x624] ss:$16 sps:$4 sm:$0xff]  }
  0x4c   :  { %1700 = vmatpush1.bf16.msra.mxu0 %v5227_v18  ;;  %1783 = vmatprep.subr.bf16.mxu1 %v5238_v21  ;;  %v5314_v18 = vld [vmem:[%s7737_s1 + $0x208] ss:$16 sps:$4 sm:$0xff]  }
  0x4d   :  { %1701 = vmatprep.subr.bf16.mxu0 %v5235_v20  ;;  %v5322_v20 = vld [vmem:[%s7737_s1 + $0x22c] ss:$16 sps:$4 sm:$0xff]  }
  0x4e   :  { %v46_v21 = vld [vmem:[%s7738_s0 + $0x38] sm:$0x3f] }
  0x4f   :  { %1784 = vmatpush1.bf16.msra.mxu1 %v5236_v23  ;;  %v5320_v23 = vld [vmem:[%s7737_s1 + $0x228] ss:$16 sps:$4 sm:$0xff]  }
  0x50   :  { %1702 = vmatpush1.bf16.msra.mxu0 %v5233_v22  ;;  %1785 = vmatprep.subr.bf16.mxu1 %v5244_v25  ;;  %v5317_v22 = vld [vmem:[%s7737_s1 + $0x620] ss:$16 sps:$4 sm:$0xff]   ;;  %v5325_v25 = vld [vmem:[%s7737_s1 + $0x644] ss:$16 sps:$4 sm:$0xff]  }
  0x51   :  { %1703 = vmatprep.subr.bf16.mxu0 %v5241_v24  ;;  %v6296_v24 = vpack.c.bf16 %v46_v21, %v46_v21  ;;  %v5409_v21 = vld [vmem:[%s7737_s1 + $0x40c] ss:$16 sps:$4 sm:$0xff]  }
  0x53   :  { %1786 = vmatpush1.bf16.msra.mxu1 %v5242_v27  ;;  %v5326_v27 = vld [vmem:[%s7737_s1 + $0x248] ss:$16 sps:$4 sm:$0xff]  }
  0x54   :  { %1704 = vmatpush1.bf16.msra.mxu0 %v5239_v26  ;;  %1787 = vmatprep.subr.bf16.mxu1 %v5250_v29  ;;  %v5323_v26 = vld [vmem:[%s7737_s1 + $0x640] ss:$16 sps:$4 sm:$0xff]  }
  0x55   :  { %1705 = vmatprep.subr.bf16.mxu0 %v5247_v28  ;;  %v5331_v28 = vld [vmem:[%s7737_s1 + $0x664] ss:$16 sps:$4 sm:$0xff]   ;;  %v5329_v29 = vld [vmem:[%s7737_s1 + $0x660] ss:$16 sps:$4 sm:$0xff]  }
  0x57   :  { %1788 = vmatpush1.bf16.msra.mxu1 %v5248_v31  ;;  %v5337_v31 = vld [vmem:[%s7737_s1 + $0x684] ss:$16 sps:$4 sm:$0xff]  }
  0x58   :  { %1706 = vmatpush1.bf16.msra.mxu0 %v5245_v30  ;;  %1789 = vmatprep.subr.bf16.mxu1 %v5256_v33  ;;  %v5332_v30 = vld [vmem:[%s7737_s1 + $0x268] ss:$16 sps:$4 sm:$0xff]   ;;  %v5335_v33 = vld [vmem:[%s7737_s1 + $0x680] ss:$16 sps:$4 sm:$0xff]  }
  0x59   :  { %1707 = vmatprep.subr.bf16.mxu0 %v5253_v32  ;;  %v5340_v32 = vld [vmem:[%s7737_s1 + $0x28c] ss:$16 sps:$4 sm:$0xff]  }
  0x5b   :  { %1790 = vmatpush1.bf16.msra.mxu1 %v5254_v37  ;;  %v5346_v37 = vld [vmem:[%s7737_s1 + $0x2ac] ss:$16 sps:$4 sm:$0xff]  }
  0x5c   :  { %1708 = vmatpush1.bf16.msra.mxu0 %v5251_v35  ;;  %1791 = vmatprep.subr.bf16.mxu1 %v5262_v39  ;;  %v5343_v35 = vld [vmem:[%s7737_s1 + $0x6a4] ss:$16 sps:$4 sm:$0xff]   ;;  %v5344_v39 = vld [vmem:[%s7737_s1 + $0x2a8] ss:$16 sps:$4 sm:$0xff]  }
  0x5d   :  { %1709 = vmatprep.subr.bf16.mxu0 %v5259_v38  ;;  %v5341_v38 = vld [vmem:[%s7737_s1 + $0x6a0] ss:$16 sps:$4 sm:$0xff]  }
  0x5f   :  { %1792 = vmatpush1.bf16.msra.mxu1 %v5260_v41  ;;  %v5352_v41 = vld [vmem:[%s7737_s1 + $0x2cc] ss:$16 sps:$4 sm:$0xff]  }
  0x60   :  { %1710 = vmatpush1.bf16.msra.mxu0 %v5257_v40  ;;  %1793 = vmatprep.subr.bf16.mxu1 %v5268_v43  ;;  %v5349_v40 = vld [vmem:[%s7737_s1 + $0x6c4] ss:$16 sps:$4 sm:$0xff]   ;;  %v5350_v43 = vld [vmem:[%s7737_s1 + $0x2c8] ss:$16 sps:$4 sm:$0xff]  }
  0x61   :  { %1711 = vmatprep.subr.bf16.mxu0 %v5265_v42  ;;  %v5347_v42 = vld [vmem:[%s7737_s1 + $0x6c0] ss:$16 sps:$4 sm:$0xff]  }
  0x63   :  { %1794 = vmatpush1.bf16.msra.mxu1 %v5266_v45  ;;  %v5358_v45 = vld [vmem:[%s7737_s1 + $0x2ec] ss:$16 sps:$4 sm:$0xff]  }
  0x64   :  { %1712 = vmatpush1.bf16.msra.mxu0 %v5263_v44  ;;  %1795 = vmatprep.subr.bf16.mxu1 %v5274_v47  ;;  %v5355_v44 = vld [vmem:[%s7737_s1 + $0x6e4] ss:$16 sps:$4 sm:$0xff]   ;;  %v5356_v47 = vld [vmem:[%s7737_s1 + $0x2e8] ss:$16 sps:$4 sm:$0xff]  }
  0x65   :  { %1713 = vmatprep.subr.bf16.mxu0 %v5271_v46  ;;  %v5353_v46 = vld [vmem:[%s7737_s1 + $0x6e0] ss:$16 sps:$4 sm:$0xff]  }
  0x67   :  { %1796 = vmatpush1.bf16.msra.mxu1 %v5272_v49  ;;  %v5364_v49 = vld [vmem:[%s7737_s1 + $0x30c] ss:$16 sps:$4 sm:$0xff]  }
  0x68   :  { %1714 = vmatpush1.bf16.msra.mxu0 %v5269_v48  ;;  %1797 = vmatprep.subr.bf16.mxu1 %v5280_v51  ;;  %v5361_v48 = vld [vmem:[%s7737_s1 + $0x704] ss:$16 sps:$4 sm:$0xff]   ;;  %v5362_v51 = vld [vmem:[%s7737_s1 + $0x308] ss:$16 sps:$4 sm:$0xff]  }
  0x69   :  { %1715 = vmatprep.subr.bf16.mxu0 %v5277_v50  ;;  %v5359_v50 = vld [vmem:[%s7737_s1 + $0x700] ss:$16 sps:$4 sm:$0xff]  }
  0x6b   :  { %1798 = vmatpush1.bf16.msra.mxu1 %v5278_v54  ;;  %v5370_v54 = vld [vmem:[%s7737_s1 + $0x32c] ss:$16 sps:$4 sm:$0xff]  }
  0x6c   :  { %1716 = vmatpush1.bf16.msra.mxu0 %v5275_v53  ;;  %1799 = vmatprep.subr.bf16.mxu1 %v5286_v56  ;;  %v5367_v53 = vld [vmem:[%s7737_s1 + $0x724] ss:$16 sps:$4 sm:$0xff]   ;;  %v5368_v56 = vld [vmem:[%s7737_s1 + $0x328] ss:$16 sps:$4 sm:$0xff]  }
  0x6d   :  { %1717 = vmatprep.subr.bf16.mxu0 %v5283_v55  ;;  %v5365_v55 = vld [vmem:[%s7737_s1 + $0x720] ss:$16 sps:$4 sm:$0xff]  }
  0x6f   :  { %1800 = vmatpush1.bf16.msra.mxu1 %v5284_v58  ;;  %v5376_v58 = vld [vmem:[%s7737_s1 + $0x34c] ss:$16 sps:$4 sm:$0xff]  }
  0x70   :  { %1718 = vmatpush1.bf16.msra.mxu0 %v5281_v57  ;;  %1801 = vmatprep.subr.bf16.mxu1 %v5292_v60  ;;  %v5373_v57 = vld [vmem:[%s7737_s1 + $0x744] ss:$16 sps:$4 sm:$0xff]   ;;  %v5374_v60 = vld [vmem:[%s7737_s1 + $0x348] ss:$16 sps:$4 sm:$0xff]  }
  0x71   :  { %1719 = vmatprep.subr.bf16.mxu0 %v5289_v59  ;;  %v5371_v59 = vld [vmem:[%s7737_s1 + $0x740] ss:$16 sps:$4 sm:$0xff]  }
  0x73   :  { %1802 = vmatpush1.bf16.msra.mxu1 %v5290_v62  ;;  %v5382_v62 = vld [vmem:[%s7737_s1 + $0x36c] ss:$16 sps:$4 sm:$0xff]  }
  0x74   :  { %1720 = vmatpush1.bf16.msra.mxu0 %v5287_v61  ;;  %1803 = vmatprep.subr.bf16.mxu1 %v5298_v0  ;;  %v5379_v61 = vld [vmem:[%s7737_s1 + $0x764] ss:$16 sps:$4 sm:$0xff]   ;;  %v5380_v0 = vld [vmem:[%s7737_s1 + $0x368] ss:$16 sps:$4 sm:$0xff]  }
  0x75   :  { %1721 = vmatprep.subr.bf16.mxu0 %v5295_v63  ;;  %v5377_v63 = vld [vmem:[%s7737_s1 + $0x760] ss:$16 sps:$4 sm:$0xff]  }
  0x77   :  { %1804 = vmatpush1.bf16.msra.mxu1 %v5296_v2  ;;  %v5388_v2 = vld [vmem:[%s7737_s1 + $0x38c] ss:$16 sps:$4 sm:$0xff]  }
  0x78   :  { %1722 = vmatpush1.bf16.msra.mxu0 %v5293_v1  ;;  %1805 = vmatprep.subr.bf16.mxu1 %v5304_v4  ;;  %v5385_v1 = vld [vmem:[%s7737_s1 + $0x784] ss:$16 sps:$4 sm:$0xff]   ;;  %v5386_v4 = vld [vmem:[%s7737_s1 + $0x388] ss:$16 sps:$4 sm:$0xff]  }
  0x79   :  { %1723 = vmatprep.subr.bf16.mxu0 %v5301_v3  ;;  %v5383_v3 = vld [vmem:[%s7737_s1 + $0x780] ss:$16 sps:$4 sm:$0xff]  }
  0x7b   :  { %1806 = vmatpush1.bf16.msra.mxu1 %v5302_v6  ;;  %v5394_v6 = vld [vmem:[%s7737_s1 + $0x3ac] ss:$16 sps:$4 sm:$0xff]  }
  0x7c   :  { %1724 = vmatpush1.bf16.msra.mxu0 %v5299_v5  ;;  %1807 = vmatprep.subr.bf16.mxu1 %v5310_v9  ;;  %v5391_v5 = vld [vmem:[%s7737_s1 + $0x7a4] ss:$16 sps:$4 sm:$0xff]   ;;  %v5392_v9 = vld [vmem:[%s7737_s1 + $0x3a8] ss:$16 sps:$4 sm:$0xff]  }
  0x7d   :  { %1725 = vmatprep.subr.bf16.mxu0 %v5307_v7  ;;  %v5389_v7 = vld [vmem:[%s7737_s1 + $0x7a0] ss:$16 sps:$4 sm:$0xff]  }
  0x7f   :  { %1808 = vmatpush1.bf16.msra.mxu1 %v5308_v12  ;;  %v5400_v12 = vld [vmem:[%s7737_s1 + $0x3cc] ss:$16 sps:$4 sm:$0xff]  }
  0x80   :  { %1726 = vmatpush1.bf16.msra.mxu0 %v5305_v10  ;;  %1818 = vmatprep.subr.bf16.mxu1 %v5316_v15  ;;  %v5397_v10 = vld [vmem:[%s7737_s1 + $0x7c4] ss:$16 sps:$4 sm:$0xff]  }
  0x81   :  { %1736 = vmatprep.subr.bf16.mxu0 %v5313_v14  ;;  %v5398_v14 = vld [vmem:[%s7737_s1 + $0x3c8] ss:$16 sps:$4 sm:$0xff]   ;;  %v5403_v15 = vld [vmem:[%s7737_s1 + $0x7e4] ss:$16 sps:$4 sm:$0xff]  }
  0x82   :  { %1810 = vmatmul.mubr.bf16.vlgmr.msra.gmra.mrb[4].mxu1 %v6063_v8  ;;  %v5328_v8 = vld [vmem:[%s7737_s1 + $0x24c] ss:$16 sps:$4 sm:$0xff]  }
  0x83   :  { %1728 = vmatmul.mubr.bf16.vlgmr.msra.gmra.mrb[0].mxu0 %v6271_v16  ;;  %1819 = vmatpush1.bf16.msra.mxu1 %v5314_v18  ;;  %v5401_v18 = vld [vmem:[%s7737_s1 + $0x7e0] ss:$16 sps:$4 sm:$0xff]  }
  0x84   :  { %1737 = vmatpush1.bf16.msra.mxu0 %v5311_v17  ;;  %1820 = vmatprep.subr.bf16.mxu1 %v5322_v20  ;;  %v5406_v17 = vld [vmem:[%s7737_s1 + $0x3ec] ss:$16 sps:$4 sm:$0xff]   ;;  %v45_v20 = vld [vmem:[%s7738_s0 + $0x30] sm:$0x3f] }
  0x85   :  { %1738 = vmatprep.subr.bf16.mxu0 %v5319_v19  ;;  %1768 = vmatprep.mubr.bf16.mxu0 %v6296_v24  ;;  %v5404_v19 = vld [vmem:[%s7737_s1 + $0x3e8] ss:$16 sps:$4 sm:$0xff]  }
  0x86   :  { %1850 = vmatprep.mubr.bf16.mxu1 %v6002_v52  ;;  %v5334_v52 = vld [vmem:[%s7737_s1 + $0x26c] ss:$16 sps:$4 sm:$0xff]  }
  0x87   :  { %1821 = vmatpush1.bf16.msra.mxu1 %v5320_v23  ;;  %v5407_v23 = vld [vmem:[%s7737_s1 + $0x408] ss:$16 sps:$4 sm:$0xff]  }
  0x88   :  { %1739 = vmatpush1.bf16.msra.mxu0 %v5317_v22  ;;  %1822 = vmatprep.subr.bf16.mxu1 %v5328_v8  ;;  %v6474_v22 = vpack.c.bf16 %v45_v20, %v45_v20  ;;  %v5410_v8 = vld [vmem:[%s7737_s1 + $0x428] ss:$16 sps:$4 sm:$0xff]   ;;  %v5457_v20 = vld [vmem:[%s7737_s1 + $0x60c] ss:$16 sps:$4 sm:$0xff]  }
  0x89   :  { %1740 = vmatprep.subr.bf16.mxu0 %v5325_v25  ;;  %v5412_v25 = vld [vmem:[%s7737_s1 + $0x42c] ss:$16 sps:$4 sm:$0xff]  }
  0x8b   :  { %1823 = vmatpush1.bf16.msra.mxu1 %v5326_v27  ;;  %v5503_v27 = vld [vmem:[%s7739_s3] ss:$8 sps:$4 sm:$0xff]  }
  0x8c   :  { %1741 = vmatpush1.bf16.msra.mxu0 %v5323_v26  ;;  %1824 = vmatprep.subr.bf16.mxu1 %v5334_v52  ;;  %v5415_v26 = vld [vmem:[%s7737_s1 + $0x44c] ss:$16 sps:$4 sm:$0xff]   ;;  %v5413_v52 = vld [vmem:[%s7737_s1 + $0x448] ss:$16 sps:$4 sm:$0xff]  }
  0x8d   :  { %1742 = vmatprep.subr.bf16.mxu0 %v5331_v28  ;;  %v5508_v28 = vld [vmem:[%s7739_s3 + $0x14] ss:$8 sps:$4 sm:$0xff]  }
  0x8f   :  { %1825 = vmatpush1.bf16.msra.mxu1 %v5332_v30  ;;  %v5511_v30 = vld [vmem:[%s7739_s3 + $0x24] ss:$8 sps:$4 sm:$0xff]  }
  0x90   :  { %1743 = vmatpush1.bf16.msra.mxu0 %v5329_v29  ;;  %1826 = vmatprep.subr.bf16.mxu1 %v5340_v32  ;;  %v5506_v29 = vld [vmem:[%s7739_s3 + $0x10] ss:$8 sps:$4 sm:$0xff]   ;;  %v5421_v32 = vld [vmem:[%s7737_s1 + $0x48c] ss:$16 sps:$4 sm:$0xff]  }
  0x91   :  { %1744 = vmatprep.subr.bf16.mxu0 %v5337_v31  ;;  %v5416_v31 = vld [vmem:[%s7737_s1 + $0x468] ss:$16 sps:$4 sm:$0xff]  }
  0x93   :  { %1827 = vmatpush1.bf16.msra.mxu1 %v5338_v34  ;;  %v5514_v34 = vld [vmem:[%s7739_s3 + $0x34] ss:$8 sps:$4 sm:$0xff]  }
  0x94   :  { %1745 = vmatpush1.bf16.msra.mxu0 %v5335_v33  ;;  %1828 = vmatprep.subr.bf16.mxu1 %v5346_v37  ;;  %v5509_v33 = vld [vmem:[%s7739_s3 + $0x20] ss:$8 sps:$4 sm:$0xff]   ;;  %v5424_v37 = vld [vmem:[%s7737_s1 + $0x4ac] ss:$16 sps:$4 sm:$0xff]  }
  0x95   :  { %1746 = vmatprep.subr.bf16.mxu0 %v5343_v35  ;;  %v5419_v35 = vld [vmem:[%s7737_s1 + $0x488] ss:$16 sps:$4 sm:$0xff]  }
  0x97   :  { %1829 = vmatpush1.bf16.msra.mxu1 %v5344_v39  ;;  %v5517_v39 = vld [vmem:[%s7739_s3 + $0x44] ss:$8 sps:$4 sm:$0xff]  }
  0x98   :  { %1747 = vmatpush1.bf16.msra.mxu0 %v5341_v38  ;;  %1830 = vmatprep.subr.bf16.mxu1 %v5352_v41  ;;  %v5512_v38 = vld [vmem:[%s7739_s3 + $0x30] ss:$8 sps:$4 sm:$0xff]   ;;  %v5427_v41 = vld [vmem:[%s7737_s1 + $0x4cc] ss:$16 sps:$4 sm:$0xff]  }
  0x99   :  { %1748 = vmatprep.subr.bf16.mxu0 %v5349_v40  ;;  %v5422_v40 = vld [vmem:[%s7737_s1 + $0x4a8] ss:$16 sps:$4 sm:$0xff]  }
  0x9b   :  { %1831 = vmatpush1.bf16.msra.mxu1 %v5350_v43  ;;  %v5520_v43 = vld [vmem:[%s7739_s3 + $0x54] ss:$8 sps:$4 sm:$0xff]  }
  0x9c   :  { %1749 = vmatpush1.bf16.msra.mxu0 %v5347_v42  ;;  %1832 = vmatprep.subr.bf16.mxu1 %v5358_v45  ;;  %v5515_v42 = vld [vmem:[%s7739_s3 + $0x40] ss:$8 sps:$4 sm:$0xff]   ;;  %v5518_v45 = vld [vmem:[%s7739_s3 + $0x50] ss:$8 sps:$4 sm:$0xff]  }
  0x9d   :  { %1750 = vmatprep.subr.bf16.mxu0 %v5355_v44  ;;  %v5425_v44 = vld [vmem:[%s7737_s1 + $0x4c8] ss:$16 sps:$4 sm:$0xff]  }
  0x9f   :  { %1833 = vmatpush1.bf16.msra.mxu1 %v5356_v47  ;;  %v5523_v47 = vld [vmem:[%s7739_s3 + $0x64] ss:$8 sps:$4 sm:$0xff]  }
  0xa0   :  { %1751 = vmatpush1.bf16.msra.mxu0 %v5353_v46  ;;  %1834 = vmatprep.subr.bf16.mxu1 %v5364_v49  ;;  %v5430_v46 = vld [vmem:[%s7737_s1 + $0x4ec] ss:$16 sps:$4 sm:$0xff]   ;;  %v5521_v49 = vld [vmem:[%s7739_s3 + $0x60] ss:$8 sps:$4 sm:$0xff]  }
  0xa1   :  { %1752 = vmatprep.subr.bf16.mxu0 %v5361_v48  ;;  %v5428_v48 = vld [vmem:[%s7737_s1 + $0x4e8] ss:$16 sps:$4 sm:$0xff]  }
  0xa3   :  { %1835 = vmatpush1.bf16.msra.mxu1 %v5362_v51  ;;  %v5526_v51 = vld [vmem:[%s7739_s3 + $0x74] ss:$8 sps:$4 sm:$0xff]  }
  0xa4   :  { %1753 = vmatpush1.bf16.msra.mxu0 %v5359_v50  ;;  %1836 = vmatprep.subr.bf16.mxu1 %v5370_v54  ;;  %v5433_v50 = vld [vmem:[%s7737_s1 + $0x50c] ss:$16 sps:$4 sm:$0xff]   ;;  %v5524_v54 = vld [vmem:[%s7739_s3 + $0x70] ss:$8 sps:$4 sm:$0xff]  }
  0xa5   :  { %1754 = vmatprep.subr.bf16.mxu0 %v5367_v53  ;;  %v5431_v53 = vld [vmem:[%s7737_s1 + $0x508] ss:$16 sps:$4 sm:$0xff]  }
  0xa7   :  { %1837 = vmatpush1.bf16.msra.mxu1 %v5368_v56  ;;  %v5529_v56 = vld [vmem:[%s7739_s3 + $0x84] ss:$8 sps:$4 sm:$0xff]  }
  0xa8   :  { %1755 = vmatpush1.bf16.msra.mxu0 %v5365_v55  ;;  %1838 = vmatprep.subr.bf16.mxu1 %v5376_v58  ;;  %v5436_v55 = vld [vmem:[%s7737_s1 + $0x52c] ss:$16 sps:$4 sm:$0xff]   ;;  %v5527_v58 = vld [vmem:[%s7739_s3 + $0x80] ss:$8 sps:$4 sm:$0xff]  }
  0xa9   :  { %1756 = vmatprep.subr.bf16.mxu0 %v5373_v57  ;;  %v5434_v57 = vld [vmem:[%s7737_s1 + $0x528] ss:$16 sps:$4 sm:$0xff]  }
  0xab   :  { %1839 = vmatpush1.bf16.msra.mxu1 %v5374_v60  ;;  %v5532_v60 = vld [vmem:[%s7739_s3 + $0x94] ss:$8 sps:$4 sm:$0xff]  }
  0xac   :  { %1757 = vmatpush1.bf16.msra.mxu0 %v5371_v59  ;;  %1840 = vmatprep.subr.bf16.mxu1 %v5382_v62  ;;  %v5439_v59 = vld [vmem:[%s7737_s1 + $0x54c] ss:$16 sps:$4 sm:$0xff]   ;;  %v5530_v62 = vld [vmem:[%s7739_s3 + $0x90] ss:$8 sps:$4 sm:$0xff]  }
  0xad   :  { %1758 = vmatprep.subr.bf16.mxu0 %v5379_v61  ;;  %v5437_v61 = vld [vmem:[%s7737_s1 + $0x548] ss:$16 sps:$4 sm:$0xff]  }
  0xaf   :  { %1841 = vmatpush1.bf16.msra.mxu1 %v5380_v0  ;;  %v5535_v0 = vld [vmem:[%s7739_s3 + $0xa4] ss:$8 sps:$4 sm:$0xff]  }
  0xb0   :  { %1759 = vmatpush1.bf16.msra.mxu0 %v5377_v63  ;;  %1842 = vmatprep.subr.bf16.mxu1 %v5388_v2  ;;  %v5442_v63 = vld [vmem:[%s7737_s1 + $0x56c] ss:$16 sps:$4 sm:$0xff]   ;;  %v5533_v2 = vld [vmem:[%s7739_s3 + $0xa0] ss:$8 sps:$4 sm:$0xff]  }
  0xb1   :  { %1760 = vmatprep.subr.bf16.mxu0 %v5385_v1  ;;  %v5440_v1 = vld [vmem:[%s7737_s1 + $0x568] ss:$16 sps:$4 sm:$0xff]  }
  0xb3   :  { %1843 = vmatpush1.bf16.msra.mxu1 %v5386_v4  ;;  %v5538_v4 = vld [vmem:[%s7739_s3 + $0xb4] ss:$8 sps:$4 sm:$0xff]  }
  0xb4   :  { %1761 = vmatpush1.bf16.msra.mxu0 %v5383_v3  ;;  %1844 = vmatprep.subr.bf16.mxu1 %v5394_v6  ;;  %v5445_v3 = vld [vmem:[%s7737_s1 + $0x58c] ss:$16 sps:$4 sm:$0xff]   ;;  %v5536_v6 = vld [vmem:[%s7739_s3 + $0xb0] ss:$8 sps:$4 sm:$0xff]  }
  0xb5   :  { %1762 = vmatprep.subr.bf16.mxu0 %v5391_v5  ;;  %v5443_v5 = vld [vmem:[%s7737_s1 + $0x588] ss:$16 sps:$4 sm:$0xff]  }
  0xb7   :  { %1845 = vmatpush1.bf16.msra.mxu1 %v5392_v9  ;;  %v5541_v9 = vld [vmem:[%s7739_s3 + $0xc4] ss:$8 sps:$4 sm:$0xff]  }
  0xb8   :  { %1763 = vmatpush1.bf16.msra.mxu0 %v5389_v7  ;;  %1846 = vmatprep.subr.bf16.mxu1 %v5400_v12  ;;  %v5448_v7 = vld [vmem:[%s7737_s1 + $0x5ac] ss:$16 sps:$4 sm:$0xff]   ;;  %v5539_v12 = vld [vmem:[%s7739_s3 + $0xc0] ss:$8 sps:$4 sm:$0xff]  }
  0xb9   :  { %1764 = vmatprep.subr.bf16.mxu0 %v5397_v10  ;;  %v5446_v10 = vld [vmem:[%s7737_s1 + $0x5a8] ss:$16 sps:$4 sm:$0xff]  }
  0xbb   :  { %1847 = vmatpush1.bf16.msra.mxu1 %v5398_v14  ;;  %v5544_v14 = vld [vmem:[%s7739_s3 + $0xd4] ss:$8 sps:$4 sm:$0xff]  }
  0xbc   :  { %1765 = vmatpush1.bf16.msra.mxu0 %v5395_v13  ;;  %1848 = vmatprep.subr.bf16.mxu1 %v5406_v17  ;;  %v5451_v13 = vld [vmem:[%s7737_s1 + $0x5cc] ss:$16 sps:$4 sm:$0xff]   ;;  %v5542_v17 = vld [vmem:[%s7739_s3 + $0xd0] ss:$8 sps:$4 sm:$0xff]  }
  0xbd   :  { %1766 = vmatprep.subr.bf16.mxu0 %v5403_v15  ;;  %v5449_v15 = vld [vmem:[%s7737_s1 + $0x5c8] ss:$16 sps:$4 sm:$0xff]  }
  0xbf   :  { %1849 = vmatpush1.bf16.msra.mxu1 %v5404_v19  ;;  %v5452_v19 = vld [vmem:[%s7737_s1 + $0x5e8] ss:$16 sps:$4 sm:$0xff]  }
  0xc0   :  { %1767 = vmatpush1.bf16.msra.mxu0 %v5401_v18  ;;  %1859 = vmatprep.subr.bf16.mxu1 %v5409_v21  ;;  %v5454_v18 = vld [vmem:[%s7737_s1 + $0x5ec] ss:$16 sps:$4 sm:$0xff]   ;;  %v5455_v21 = vld [vmem:[%s7737_s1 + $0x608] ss:$16 sps:$4 sm:$0xff]  }
  0xc2   :  { %1851 = vmatmul.mubr.bf16.vlgmr.msra.gmra.mrb[4].mxu1 %v6071_v11  ;;  %v5505_v11 = vld [vmem:[%s7739_s3 + $0x4] ss:$8 sps:$4 sm:$0xff]  }
  0xc3   :  { %1769 = vmatmul.mubr.bf16.vlgmr.msra.gmra.mrb[0].mxu0 %v6474_v22  ;;  %1860 = vmatpush1.bf16.msra.mxu1 %v5407_v23  ;;  %v5460_v23 = vld [vmem:[%s7737_s1 + $0x62c] ss:$16 sps:$4 sm:$0xff]  }
  0xc4   :  { %1891 = vmatprep.mubr.bf16.mxu1 %v6148_v36  ;;  %1861 = vmatprep.subr.bf16.mxu1 %v5412_v25  ;;  %v5418_v36 = vld [vmem:[%s7737_s1 + $0x46c] ss:$16 sps:$4 sm:$0xff]   ;;  %v5458_v25 = vld [vmem:[%s7737_s1 + $0x628] ss:$16 sps:$4 sm:$0xff]  }
  0xc5   :  { %2353 = vmatprep.subr.bf16.mxu0 %v5505_v11  ;;  %v5467_v11 = vld [vmem:[%s7737_s1 + $0x688] ss:$16 sps:$4 sm:$0xff]  }
  0xc6   :  { %2354 = vmatpush1.bf16.msra.mxu0 %v5503_v27  ;;  %v5469_v27 = vld [vmem:[%s7737_s1 + $0x68c] ss:$16 sps:$4 sm:$0xff]  }
  0xc7   :  { %1862 = vmatpush1.bf16.msra.mxu1 %v5410_v8  ;;  %2355 = vmatprep.subr.bf16.mxu0 %v5508_v28  ;;  %v5463_v8 = vld [vmem:[%s7737_s1 + $0x64c] ss:$16 sps:$4 sm:$0xff]  }
  0xc8   :  { %1863 = vmatprep.subr.bf16.mxu1 %v5415_v26  ;;  %v5461_v26 = vld [vmem:[%s7737_s1 + $0x648] ss:$16 sps:$4 sm:$0xff]   ;;  %v5472_v28 = vld [vmem:[%s7737_s1 + $0x6ac] ss:$16 sps:$4 sm:$0xff]  }
  0xca   :  { %2356 = vmatpush1.bf16.msra.mxu0 %v5506_v29 }
  0xcb   :  { %1864 = vmatpush1.bf16.msra.mxu1 %v5413_v52  ;;  %2357 = vmatprep.subr.bf16.mxu0 %v5511_v30  ;;  %v5470_v52 = vld [vmem:[%s7737_s1 + $0x6a8] ss:$16 sps:$4 sm:$0xff]   ;;  %v5547_v30 = vld [vmem:[%s7739_s3 + $0xe4] ss:$8 sps:$4 sm:$0xff]  }
  0xcc   :  { %1865 = vmatprep.subr.bf16.mxu1 %v5418_v36  ;;  %v5475_v36 = vld [vmem:[%s7737_s1 + $0x6cc] ss:$16 sps:$4 sm:$0xff]  }
  0xce   :  { %2358 = vmatpush1.bf16.msra.mxu0 %v5509_v33 }
  0xcf   :  { %1866 = vmatpush1.bf16.msra.mxu1 %v5416_v31  ;;  %2359 = vmatprep.subr.bf16.mxu0 %v5514_v34  ;;  %v5473_v34 = vld [vmem:[%s7737_s1 + $0x6c8] ss:$16 sps:$4 sm:$0xff]  }
  0xd0   :  { %1867 = vmatprep.subr.bf16.mxu1 %v5421_v32  ;;  %v5545_v32 = vld [vmem:[%s7739_s3 + $0xe0] ss:$8 sps:$4 sm:$0xff]  }
  0xd2   :  { %2360 = vmatpush1.bf16.msra.mxu0 %v5512_v38  ;;  %v5550_v38 = vld [vmem:[%s7739_s3 + $0xf4] ss:$8 sps:$4 sm:$0xff]  }
  0xd3   :  { %1868 = vmatpush1.bf16.msra.mxu1 %v5419_v35  ;;  %2361 = vmatprep.subr.bf16.mxu0 %v5517_v39  ;;  %v5548_v39 = vld [vmem:[%s7739_s3 + $0xf0] ss:$8 sps:$4 sm:$0xff]  }
  0xd4   :  { %1869 = vmatprep.subr.bf16.mxu1 %v5424_v37  ;;  %v5478_v37 = vld [vmem:[%s7737_s1 + $0x6ec] ss:$16 sps:$4 sm:$0xff]  }
  0xd6   :  { %2362 = vmatpush1.bf16.msra.mxu0 %v5515_v42  ;;  %v5479_v42 = vld [vmem:[%s7737_s1 + $0x708] ss:$16 sps:$4 sm:$0xff]  }
  0xd7   :  { %1870 = vmatpush1.bf16.msra.mxu1 %v5422_v40  ;;  %2363 = vmatprep.subr.bf16.mxu0 %v5520_v43  ;;  %v5476_v40 = vld [vmem:[%s7737_s1 + $0x6e8] ss:$16 sps:$4 sm:$0xff]   ;;  %v5553_v43 = vld [vmem:[%s7739_s3 + $0x104] ss:$8 sps:$4 sm:$0xff]  }
  0xd8   :  { %1871 = vmatprep.subr.bf16.mxu1 %v5427_v41  ;;  %v5481_v41 = vld [vmem:[%s7737_s1 + $0x70c] ss:$16 sps:$4 sm:$0xff]  }
  0xda   :  { %2364 = vmatpush1.bf16.msra.mxu0 %v5518_v45  ;;  %v5482_v45 = vld [vmem:[%s7737_s1 + $0x728] ss:$16 sps:$4 sm:$0xff]  }
  0xdb   :  { %1872 = vmatpush1.bf16.msra.mxu1 %v5425_v44  ;;  %2365 = vmatprep.subr.bf16.mxu0 %v5523_v47  ;;  %v5484_v44 = vld [vmem:[%s7737_s1 + $0x72c] ss:$16 sps:$4 sm:$0xff]   ;;  %v5485_v47 = vld [vmem:[%s7737_s1 + $0x748] ss:$16 sps:$4 sm:$0xff]  }
  0xdc   :  { %1873 = vmatprep.subr.bf16.mxu1 %v5430_v46  ;;  %v5487_v46 = vld [vmem:[%s7737_s1 + $0x74c] ss:$16 sps:$4 sm:$0xff]  }
  0xde   :  { %2366 = vmatpush1.bf16.msra.mxu0 %v5521_v49  ;;  %v5488_v49 = vld [vmem:[%s7737_s1 + $0x768] ss:$16 sps:$4 sm:$0xff]  }
  0xdf   :  { %1874 = vmatpush1.bf16.msra.mxu1 %v5428_v48  ;;  %2367 = vmatprep.subr.bf16.mxu0 %v5526_v51  ;;  %v5490_v48 = vld [vmem:[%s7737_s1 + $0x76c] ss:$16 sps:$4 sm:$0xff]   ;;  %v5491_v51 = vld [vmem:[%s7737_s1 + $0x788] ss:$16 sps:$4 sm:$0xff]  }
  0xe0   :  { %1875 = vmatprep.subr.bf16.mxu1 %v5433_v50  ;;  %v5493_v50 = vld [vmem:[%s7737_s1 + $0x78c] ss:$16 sps:$4 sm:$0xff]  }
  0xe2   :  { %2368 = vmatpush1.bf16.msra.mxu0 %v5524_v54  ;;  %v5494_v54 = vld [vmem:[%s7737_s1 + $0x7a8] ss:$16 sps:$4 sm:$0xff]  }
  0xe3   :  { %1876 = vmatpush1.bf16.msra.mxu1 %v5431_v53  ;;  %2369 = vmatprep.subr.bf16.mxu0 %v5529_v56  ;;  %v5496_v53 = vld [vmem:[%s7737_s1 + $0x7ac] ss:$16 sps:$4 sm:$0xff]   ;;  %v5497_v56 = vld [vmem:[%s7737_s1 + $0x7c8] ss:$16 sps:$4 sm:$0xff]  }
  0xe4   :  { %1877 = vmatprep.subr.bf16.mxu1 %v5436_v55  ;;  %v5499_v55 = vld [vmem:[%s7737_s1 + $0x7cc] ss:$16 sps:$4 sm:$0xff]  }
  0xe6   :  { %2370 = vmatpush1.bf16.msra.mxu0 %v5527_v58  ;;  %v5500_v58 = vld [vmem:[%s7737_s1 + $0x7e8] ss:$16 sps:$4 sm:$0xff]  }
  0xe7   :  { %1878 = vmatpush1.bf16.msra.mxu1 %v5434_v57  ;;  %2371 = vmatprep.subr.bf16.mxu0 %v5532_v60  ;;  %v5502_v57 = vld [vmem:[%s7737_s1 + $0x7ec] ss:$16 sps:$4 sm:$0xff]  }
  0xe8   :  { %1879 = vmatprep.subr.bf16.mxu1 %v5439_v59  ;;  %v313_v59 = vlaneseq }
  0xea   :  { %2372 = vmatpush1.bf16.msra.mxu0 %v5530_v62  ;;  %v6772_v60 = vshrl.u32 %v313_v59, 7  ;;  %v6780_v62 = vld [vmem:[%s7740_s2] sm:$0xf] }
  0xeb   :  { %1880 = vmatpush1.bf16.msra.mxu1 %v5437_v61  ;;  %2373 = vmatprep.subr.bf16.mxu0 %v5535_v0 }
  0xec   :  { %1881 = vmatprep.subr.bf16.mxu1 %v5442_v63  ;;  %v6775_v61 = vsub.s32 0, %v6772_v60  ;;  %v6783_v63 = vsub.s32 1, %v6772_v60 }
  0xee   :  { %2374 = vmatpush1.bf16.msra.mxu0 %v5533_v2  ;;  %v316_v0 = vrot.slane %v6780_v62, %v6775_v61 }
  0xef   :  { %1882 = vmatpush1.bf16.msra.mxu1 %v5440_v1  ;;  %2375 = vmatprep.subr.bf16.mxu0 %v5538_v4 }
  0xf0   :  { %1883 = vmatprep.subr.bf16.mxu1 %v5445_v3 }
  0xf2   :  { %2376 = vmatpush1.bf16.msra.mxu0 %v5536_v6 }
  0xf3   :  { %1884 = vmatpush1.bf16.msra.mxu1 %v5443_v5  ;;  %2377 = vmatprep.subr.bf16.mxu0 %v5541_v9 }
  0xf4   :  { %1885 = vmatprep.subr.bf16.mxu1 %v5448_v7 }
  0xf6   :  { %2378 = vmatpush1.bf16.msra.mxu0 %v5539_v12 }
  0xf7   :  { %1886 = vmatpush1.bf16.msra.mxu1 %v5446_v10  ;;  %2379 = vmatprep.subr.bf16.mxu0 %v5544_v14 }
  0xf8   :  { %1887 = vmatprep.subr.bf16.mxu1 %v5451_v13 }
  0xfa   :  { %2380 = vmatpush1.bf16.msra.mxu0 %v5542_v17  ;;  %v5551_v17 = vld [vmem:[%s7739_s3 + $0x100] ss:$8 sps:$4 sm:$0xff]  }
  0xfb   :  { %1888 = vmatpush1.bf16.msra.mxu1 %v5449_v15  ;;  %2381 = vmatprep.subr.bf16.mxu0 %v5547_v30  ;;  %v2459_v30 = vld [vmem:[%s7741_s5 + $0x80] sm:$0xff] }
  0xfc   :  { %1889 = vmatprep.subr.bf16.mxu1 %v5454_v18 }
  0xfe   :  { %2382 = vmatpush1.bf16.msra.mxu0 %v5545_v32  ;;  %v5562_v32 = vld [vmem:[%s7739_s3 + $0x134] ss:$8 sps:$4 sm:$0xff]  }
  0xff   :  { %1890 = vmatpush1.bf16.msra.mxu1 %v5452_v19  ;;  %2383 = vmatprep.subr.bf16.mxu0 %v5550_v38  ;;  %v5556_v19 = vld [vmem:[%s7739_s3 + $0x114] ss:$8 sps:$4 sm:$0xff]   ;;  %v2471_v38 = vld [vmem:[%s7741_s5 + $0xe0] sm:$0xff] }
 0x100   :  { %1900 = vmatprep.subr.bf16.mxu1 %v5457_v20  ;;  %v5554_v20 = vld [vmem:[%s7739_s3 + $0x110] ss:$8 sps:$4 sm:$0xff]  }
 0x102   :  { %1892 = vmatmul.mubr.bf16.vlgmr.msra.gmra.mrb[4].mxu1 %v6271_v16  ;;  %v5466_v16 = vld [vmem:[%s7737_s1 + $0x66c] ss:$16 sps:$4 sm:$0xff]   ;;  %2384 = vmatpush1.bf16.msra.mxu0 %v5548_v39 }
 0x103   :  { %1901 = vmatpush1.bf16.msra.mxu1 %v5455_v21  ;;  %1932 = vmatprep.mubr.bf16.mxu1 %v6296_v24  ;;  %v5464_v24 = vld [vmem:[%s7737_s1 + $0x668] ss:$16 sps:$4 sm:$0xff]   ;;  %v5559_v21 = vld [vmem:[%s7739_s3 + $0x124] ss:$8 sps:$4 sm:$0xff]  }
 0x104   :  { %1902 = vmatprep.subr.bf16.mxu1 %v5460_v23  ;;  %2394 = vmatprep.subr.bf16.mxu0 %v5553_v43  ;;  %v2443_v23 = vld [vmem:[%s7741_s5] sm:$0xff] }
 0x105   :  { %v5565_v39 = vld [vmem:[%s7739_s3 + $0x144] ss:$8 sps:$4 sm:$0xff]  }
 0x106   :  { %v2475_v43 = vld [vmem:[%s7741_s5 + $0x100] sm:$0xff] }
 0x107   :  { %1903 = vmatpush1.bf16.msra.mxu1 %v5458_v25  ;;  %v2447_v25 = vld [vmem:[%s7741_s5 + $0x20] sm:$0xff] }
 0x108   :  { %1904 = vmatprep.subr.bf16.mxu1 %v5463_v8  ;;  %v6811_v8 = vld [vmem:[%s7741_s5 + $0x10] sm:$0xff] }
 0x10b   :  { %1905 = vmatpush1.bf16.msra.mxu1 %v5461_v26  ;;  %v4815_v26 = vcombine.low %v2443_v23, %v2447_v25 }
 0x10c   :  { %1906 = vmatprep.subr.bf16.mxu1 %v5466_v16  ;;  %v4816_v16 = vcombine.high %v2443_v23, %v2447_v25  ;;  %v2523_v23 = vld [vmem:[%s7741_s5 + $0x280] sm:$0xff] }
 0x10d   :  { %v2527_v25 = vld [vmem:[%s7741_s5 + $0x2a0] sm:$0xff] }
 0x10f   :  { %1907 = vmatpush1.bf16.msra.mxu1 %v5464_v24  ;;  %v6816_v24 = vld [vmem:[%s7741_s5 + $0x30] sm:$0xff] }
 0x110   :  { %1908 = vmatprep.subr.bf16.mxu1 %v5469_v27  ;;  %v2451_v27 = vld [vmem:[%s7741_s5 + $0x40] sm:$0xff] }
 0x113   :  { %1909 = vmatpush1.bf16.msra.mxu1 %v5467_v11  ;;  %v2455_v11 = vld [vmem:[%s7741_s5 + $0x60] sm:$0xff] }
 0x114   :  { %1910 = vmatprep.subr.bf16.mxu1 %v5472_v28  ;;  %v4819_v28 = vcombine.low %v6811_v8, %v6816_v24 }
 0x115   :  { %v6697_v29 = vpop.f32.mrb[0].mxu1 }
 0x116   :  { %v1649_v31 = vpop.f32.mrb[1].mxu1  ;;  %v1648_v1 = vadd.f32 %v6697_v29, %v316_v0  ;;  %v4823_v29 = vcombine.low %v2451_v27, %v2455_v11  ;;  %v5572_v0 = vld [vmem:[%s7739_s3 + $0x170] ss:$8 sps:$4 sm:$0xff]  }
 0x117   :  { %v1651_v33 = vpop.f32.mrb[2].mxu1  ;;  %1911 = vmatpush1.bf16.msra.mxu1 %v5470_v52  ;;  %v4824_v52 = vcombine.high %v2451_v27, %v2455_v11  ;;  %v5584_v27 = vld [vmem:[%s7739_s3 + $0x1b0] ss:$8 sps:$4 sm:$0xff]   ;;  %v4895_v11 = vcombine.low %v2523_v23, %v2527_v25 }
 0x118   :  { %v1652_v35 = vpop.f32.mrb[3].mxu1  ;;  %1912 = vmatprep.subr.bf16.mxu1 %v5475_v36  ;;  %v5557_v36 = vld [vmem:[%s7739_s3 + $0x120] ss:$8 sps:$4 sm:$0xff]  }
 0x11b   :  { %1913 = vmatpush1.bf16.msra.mxu1 %v5473_v34  ;;  %v5560_v34 = vld [vmem:[%s7739_s3 + $0x130] ss:$8 sps:$4 sm:$0xff]  }
 0x11c   :  { %1914 = vmatprep.subr.bf16.mxu1 %v5478_v37  ;;  %v2467_v37 = vld [vmem:[%s7741_s5 + $0xc0] sm:$0xff] }
 0x11f   :  { %1915 = vmatpush1.bf16.msra.mxu1 %v5476_v40  ;;  %v4840_v40 = vcombine.high %v2467_v37, %v2471_v38 }
 0x120   :  { %1916 = vmatprep.subr.bf16.mxu1 %v5481_v41  ;;  %v5563_v41 = vld [vmem:[%s7739_s3 + $0x140] ss:$8 sps:$4 sm:$0xff]  }
 0x123   :  { %1917 = vmatpush1.bf16.msra.mxu1 %v5479_v42  ;;  %v4839_v42 = vcombine.low %v2467_v37, %v2471_v38  ;;  %v5590_v38 = vld [vmem:[%s7739_s3 + $0x1d0] ss:$8 sps:$4 sm:$0xff]  }
 0x124   :  { %1918 = vmatprep.subr.bf16.mxu1 %v5484_v44  ;;  %v2479_v44 = vld [vmem:[%s7741_s5 + $0x120] sm:$0xff] }
 0x127   :  { %1919 = vmatpush1.bf16.msra.mxu1 %v5482_v45  ;;  %v5568_v45 = vld [vmem:[%s7739_s3 + $0x154] ss:$8 sps:$4 sm:$0xff]  }
 0x128   :  { %1920 = vmatprep.subr.bf16.mxu1 %v5487_v46  ;;  %v4848_v46 = vcombine.high %v2475_v43, %v2479_v44 }
 0x12b   :  { %1921 = vmatpush1.bf16.msra.mxu1 %v5485_v47  ;;  %v5566_v47 = vld [vmem:[%s7739_s3 + $0x150] ss:$8 sps:$4 sm:$0xff]  }
 0x12c   :  { %1922 = vmatprep.subr.bf16.mxu1 %v5490_v48  ;;  %v4847_v48 = vcombine.low %v2475_v43, %v2479_v44  ;;  %v5593_v44 = vld [vmem:[%s7739_s3 + $0x1e0] ss:$8 sps:$4 sm:$0xff]  }
 0x12f   :  { %1923 = vmatpush1.bf16.msra.mxu1 %v5488_v49  ;;  %v2483_v49 = vld [vmem:[%s7741_s5 + $0x140] sm:$0xff] }
 0x130   :  { %1924 = vmatprep.subr.bf16.mxu1 %v5493_v50  ;;  %v2487_v50 = vld [vmem:[%s7741_s5 + $0x160] sm:$0xff] }
 0x133   :  { %1925 = vmatpush1.bf16.msra.mxu1 %v5491_v51  ;;  %v5571_v51 = vld [vmem:[%s7739_s3 + $0x164] ss:$8 sps:$4 sm:$0xff]  }
 0x134   :  { %1926 = vmatprep.subr.bf16.mxu1 %v5496_v53  ;;  %v4856_v53 = vcombine.high %v2483_v49, %v2487_v50 }
 0x137   :  { %1927 = vmatpush1.bf16.msra.mxu1 %v5494_v54  ;;  %v5569_v54 = vld [vmem:[%s7739_s3 + $0x160] ss:$8 sps:$4 sm:$0xff]  }
 0x138   :  { %1928 = vmatprep.subr.bf16.mxu1 %v5499_v55  ;;  %v4855_v55 = vcombine.low %v2483_v49, %v2487_v50  ;;  %v323_v49 = vsub.s32 2, %v6772_v60  ;;  %v327_v50 = vsub.s32 3, %v6772_v60 }
 0x13b   :  { %1929 = vmatpush1.bf16.msra.mxu1 %v5497_v56  ;;  %v2491_v56 = vld [vmem:[%s7741_s5 + $0x180] sm:$0xff] }
 0x13c   :  { %1930 = vmatprep.subr.bf16.mxu1 %v5502_v57  ;;  %v2495_v57 = vld [vmem:[%s7741_s5 + $0x1a0] sm:$0xff] }
 0x13d   :  { %v4864_v59 = vcombine.high %v2491_v56, %v2495_v57 }
 0x13f   :  { %1931 = vmatpush1.bf16.msra.mxu1 %v5500_v58  ;;  %v5574_v58 = vld [vmem:[%s7739_s3 + $0x174] ss:$8 sps:$4 sm:$0xff]  }
 0x140   :  { %3253 = vmatprep.subr.bf16.mxu1 %v4816_v16  ;;  %v4896_v16 = vcombine.high %v2523_v23, %v2527_v25  ;;  %v2493_v25 = vld [vmem:[%s7741_s5 + $0x190] sm:$0xff] }
 0x142   :  { %1933 = vmatmul.mubr.bf16.vlgmr.msra.gmra.mrb[4].mxu1 %v6474_v22  ;;  %v320_v22 = vrot.slane %v6780_v62, %v6783_v63 }
 0x143   :  { %3254 = vmatpush1.bf16.msra.mxu1 %v4815_v26  ;;  %v5586_v26 = vld [vmem:[%s7739_s3 + $0x1b4] ss:$8 sps:$4 sm:$0xff]  }
 0x144   :  { %v1650_v2 = vadd.f32 %v1649_v31, %v320_v22  ;;  %v2463_v31 = vld [vmem:[%s7741_s5 + $0xa0] sm:$0xff]  ;;  %3255 = vmatprep.subr.bf16.mxu1 %v4824_v52  ;;  %v4863_v22 = vcombine.low %v2491_v56, %v2495_v57 }
 0x145   :  { %v4832_v33 = vcombine.high %v2459_v30, %v2463_v31  ;;  %v4831_v35 = vcombine.low %v2459_v30, %v2463_v31  ;;  %v2531_v52 = vld [vmem:[%s7741_s5 + $0x2c0] sm:$0xff] }
 0x146   :  { %v5587_v31 = vld [vmem:[%s7739_s3 + $0x1c0] ss:$8 sps:$4 sm:$0xff]  }
 0x147   :  { %3256 = vmatpush1.bf16.msra.mxu1 %v4823_v29  ;;  %v5589_v29 = vld [vmem:[%s7739_s3 + $0x1c4] ss:$8 sps:$4 sm:$0xff]  }
 0x148   :  { %3257 = vmatprep.subr.bf16.mxu1 %v4832_v33  ;;  %v2539_v33 = vld [vmem:[%s7741_s5 + $0x300] sm:$0xff] }
 0x14b   :  { %3258 = vmatpush1.bf16.msra.mxu1 %v4831_v35  ;;  %v5592_v35 = vld [vmem:[%s7739_s3 + $0x1d4] ss:$8 sps:$4 sm:$0xff]  }
 0x14c   :  { %3259 = vmatprep.subr.bf16.mxu1 %v4840_v40  ;;  %v2547_v40 = vld [vmem:[%s7741_s5 + $0x340] sm:$0xff] }
 0x14f   :  { %3260 = vmatpush1.bf16.msra.mxu1 %v4839_v42  ;;  %v5595_v42 = vld [vmem:[%s7739_s3 + $0x1e4] ss:$8 sps:$4 sm:$0xff]  }
 0x150   :  { %3261 = vmatprep.subr.bf16.mxu1 %v4848_v46  ;;  %v5598_v46 = vld [vmem:[%s7739_s3 + $0x1f4] ss:$8 sps:$4 sm:$0xff]  }
 0x153   :  { %3262 = vmatpush1.bf16.msra.mxu1 %v4847_v48  ;;  %v4820_v48 = vcombine.high %v6811_v8, %v6816_v24  ;;  %v2477_v8 = vld [vmem:[%s7741_s5 + $0x110] sm:$0xff] }
 0x154   :  { %3263 = vmatprep.subr.bf16.mxu1 %v4856_v53  ;;  %v328_v53 = vrot.slane %v6780_v62, %v327_v50  ;;  %v2481_v24 = vld [vmem:[%s7741_s5 + $0x130] sm:$0xff] }
 0x157   :  { %3264 = vmatpush1.bf16.msra.mxu1 %v4855_v55 }
 0x158   :  { %3265 = vmatprep.subr.bf16.mxu1 %v4864_v59 }
 0x15b   :  { %3266 = vmatpush1.bf16.msra.mxu1 %v4863_v22 }
 0x196   :  { %v1770_v3 = vpop.f32.mrb[0].mxu0 }
 0x197   :  { %v5075_v4 = vadd.f32 %v1770_v3, %v1648_v1  ;;  %v1772_v5 = vpop.f32.mrb[1].mxu0  ;;  %v2499_v1 = vld [vmem:[%s7741_s5 + $0x1c0] sm:$0xff] }
 0x198   :  { %v5077_v6 = vadd.f32 %v1772_v5, %v1650_v2  ;;  %v1774_v7 = vpop.f32.mrb[2].mxu0  ;;  %v2503_v2 = vld [vmem:[%s7741_s5 + $0x1e0] sm:$0xff] }
 0x199   :  { %vm1941_vm0 = vcmp.ge.f32.partialorder %v5075_v4, 0.0  ;;  %v1945_v9 = vmul.f32 0.01, %v5075_v4  ;;  %v1775_v10 = vpop.f32.mrb[3].mxu0  ;;  %v5577_v3 = vld [vmem:[%s7739_s3 + $0x184] ss:$8 sps:$4 sm:$0xff]  }
 0x19a   :  { %vm1942_vm1 = vcmp.ge.f32.partialorder %v5077_v6, 0.0  ;;  %v1946_v12 = vmul.f32 0.01, %v5077_v6  ;;  %v5575_v5 = vld [vmem:[%s7739_s3 + $0x180] ss:$8 sps:$4 sm:$0xff]  }
 0x19b   :  { %v1949_v13 = vsel %vm1941_vm0, %v5075_v4, %v1945_v9  ;;  %v4872_v4 = vcombine.high %v2499_v1, %v2503_v2  ;;  %v2507_v7 = vld [vmem:[%s7741_s5 + $0x200] sm:$0xff]  ;;  %v5580_v10 = vld [vmem:[%s7739_s3 + $0x194] ss:$8 sps:$4 sm:$0xff]   ;;  %vm4433_vm0 = vcmask 1043456  }
 0x19c   :  { %v1950_v14 = vsel %vm1942_vm1, %v5077_v6, %v1946_v12  ;;  %v1953_v18 = vpack.c.bf16 %v1949_v13, %v1949_v13  ;;  %v4871_v6 = vcombine.low %v2499_v1, %v2503_v2  ;;  %v2511_v9 = vld [vmem:[%s7741_s5 + $0x220] sm:$0xff]  ;;  %v5578_v13 = vld [vmem:[%s7739_s3 + $0x190] ss:$8 sps:$4 sm:$0xff]  }
 0x19d   :  { %v1954_v15 = vpack.c.bf16 %v1950_v14, %v1950_v14  ;;  %3267 = vmatprep.subr.bf16.mxu1 %v4872_v4  ;;  %v4880_v12 = vcombine.high %v2507_v7, %v2511_v9  ;;  %v4879_v14 = vcombine.low %v2507_v7, %v2511_v9  ;;  %v2453_v2 = vld [vmem:[%s7741_s5 + $0x50] sm:$0xff] }
 0x19e   :  { %3268 = vmatpush1.bf16.msra.mxu1 %v4871_v6  ;;  %v2461_v7 = vld [vmem:[%s7741_s5 + $0x90] sm:$0xff] }
 0x19f   :  { %2385 = vmatprep.mubr.bf16.mxu0 %v1954_v15  ;;  %v2515_v15 = vld [vmem:[%s7741_s5 + $0x240] sm:$0xff]  ;;  %3269 = vmatprep.subr.bf16.mxu1 %v4880_v12  ;;  %v2465_v9 = vld [vmem:[%s7741_s5 + $0xb0] sm:$0xff] }
 0x1a0   :  { %2386 = vmatmul.mubr.bf16.vlgmr.msra.gmra.mrb[4].mxu0 %v1953_v18  ;;  %v5583_v18 = vld [vmem:[%s7739_s3 + $0x1a4] ss:$8 sps:$4 sm:$0xff]   ;;  %v4836_v12 = vcombine.high %v2461_v7, %v2465_v9 }
 0x1a1   :  { %2395 = vmatpush1.bf16.msra.mxu0 %v5551_v17  ;;  %v2519_v17 = vld [vmem:[%s7741_s5 + $0x260] sm:$0xff] }
 0x1a2   :  { %2396 = vmatprep.subr.bf16.mxu0 %v5556_v19  ;;  %v4888_v19 = vcombine.high %v2515_v15, %v2519_v17  ;;  %3270 = vmatpush1.bf16.msra.mxu1 %v4879_v14  ;;  %v2473_v14 = vld [vmem:[%s7741_s5 + $0xf0] sm:$0xff] }
 0x1a4   :  { %3271 = vmatprep.subr.bf16.mxu1 %v4888_v19  ;;  %v2485_v19 = vld [vmem:[%s7741_s5 + $0x150] sm:$0xff] }
 0x1a5   :  { %2397 = vmatpush1.bf16.msra.mxu0 %v5554_v20  ;;  %v5581_v20 = vld [vmem:[%s7739_s3 + $0x1a0] ss:$8 sps:$4 sm:$0xff]  }
 0x1a6   :  { %2398 = vmatprep.subr.bf16.mxu0 %v5559_v21  ;;  %v4887_v21 = vcombine.low %v2515_v15, %v2519_v17  ;;  %v4835_v15 = vcombine.low %v2461_v7, %v2465_v9  ;;  %v2565_v9 = vld [vmem:[%s7741_s5 + $0x3d0] sm:$0xff] }
 0x1a8   :  { %3272 = vmatpush1.bf16.msra.mxu1 %v4887_v21  ;;  %v4851_v21 = vcombine.low %v2477_v8, %v2481_v24 }
 0x1a9   :  { %2399 = vmatpush1.bf16.msra.mxu0 %v5557_v36  ;;  %v2535_v36 = vld [vmem:[%s7741_s5 + $0x2e0] sm:$0xff]  ;;  %3273 = vmatprep.subr.bf16.mxu1 %v4896_v16 }
 0x1aa   :  { %2400 = vmatprep.subr.bf16.mxu0 %v5562_v32  ;;  %v4904_v30 = vcombine.high %v2531_v52, %v2535_v36  ;;  %v4903_v32 = vcombine.low %v2531_v52, %v2535_v36  ;;  %v2505_v52 = vld [vmem:[%s7741_s5 + $0x1f0] sm:$0xff] }
 0x1ac   :  { %3274 = vmatpush1.bf16.msra.mxu1 %v4895_v11  ;;  %v2501_v11 = vld [vmem:[%s7741_s5 + $0x1d0] sm:$0xff] }
 0x1ad   :  { %2401 = vmatpush1.bf16.msra.mxu0 %v5560_v34  ;;  %v2543_v34 = vld [vmem:[%s7741_s5 + $0x320] sm:$0xff]  ;;  %3275 = vmatprep.subr.bf16.mxu1 %v4904_v30  ;;  %v2509_v30 = vld [vmem:[%s7741_s5 + $0x210] sm:$0xff] }
 0x1ae   :  { %2402 = vmatprep.subr.bf16.mxu0 %v5565_v39  ;;  %v4912_v37 = vcombine.high %v2539_v33, %v2543_v34  ;;  %v4911_v39 = vcombine.low %v2539_v33, %v2543_v34  ;;  %v2517_v34 = vld [vmem:[%s7741_s5 + $0x250] sm:$0xff] }
 0x1b0   :  { %3276 = vmatpush1.bf16.msra.mxu1 %v4903_v32  ;;  %v4875_v32 = vcombine.low %v2501_v11, %v2505_v52 }
 0x1b1   :  { %2403 = vmatpush1.bf16.msra.mxu0 %v5563_v41  ;;  %v2551_v41 = vld [vmem:[%s7741_s5 + $0x360] sm:$0xff]  ;;  %3277 = vmatprep.subr.bf16.mxu1 %v4912_v37 }
 0x1b2   :  { %2404 = vmatprep.subr.bf16.mxu0 %v5568_v45  ;;  %v4920_v43 = vcombine.high %v2547_v40, %v2551_v41  ;;  %v4919_v45 = vcombine.low %v2547_v40, %v2551_v41  ;;  %v2529_v40 = vld [vmem:[%s7741_s5 + $0x2b0] sm:$0xff] }
 0x1b4   :  { %3278 = vmatpush1.bf16.msra.mxu1 %v4911_v39  ;;  %v2525_v39 = vld [vmem:[%s7741_s5 + $0x290] sm:$0xff] }
 0x1b5   :  { %2405 = vmatpush1.bf16.msra.mxu0 %v5566_v47  ;;  %3279 = vmatprep.subr.bf16.mxu1 %v4920_v43  ;;  %v5596_v47 = vld [vmem:[%s7739_s3 + $0x1f0] ss:$8 sps:$4 sm:$0xff]  }
 0x1b6   :  { %2406 = vmatprep.subr.bf16.mxu0 %v5571_v51  ;;  %v324_v51 = vrot.slane %v6780_v62, %v323_v49  ;;  %v2533_v43 = vld [vmem:[%s7741_s5 + $0x2d0] sm:$0xff] }
 0x1b8   :  { %3280 = vmatpush1.bf16.msra.mxu1 %v4919_v45  ;;  %v4899_v45 = vcombine.low %v2525_v39, %v2529_v40 }
 0x1b9   :  { %2407 = vmatpush1.bf16.msra.mxu0 %v5569_v54 }
 0x1ba   :  { %2408 = vmatprep.subr.bf16.mxu0 %v5574_v58 }
 0x1bd   :  { %2409 = vmatpush1.bf16.msra.mxu0 %v5572_v0 }
 0x1be   :  { %2410 = vmatprep.subr.bf16.mxu0 %v5577_v3  ;;  %v2457_v3 = vld [vmem:[%s7741_s5 + $0x70] sm:$0xff] }
 0x1bf   :  { %v4828_v6 = vcombine.high %v2453_v2, %v2457_v3 }
 0x1c1   :  { %2411 = vmatpush1.bf16.msra.mxu0 %v5575_v5 }
 0x1c2   :  { %2412 = vmatprep.subr.bf16.mxu0 %v5580_v10  ;;  %v4827_v10 = vcombine.low %v2453_v2, %v2457_v3  ;;  %v2561_v2 = vld [vmem:[%s7741_s5 + $0x3b0] sm:$0xff] }
 0x1c5   :  { %2413 = vmatpush1.bf16.msra.mxu0 %v5578_v13  ;;  %v2469_v13 = vld [vmem:[%s7741_s5 + $0xd0] sm:$0xff] }
 0x1c6   :  { %2414 = vmatprep.subr.bf16.mxu0 %v5583_v18  ;;  %v4844_v17 = vcombine.high %v2469_v13, %v2473_v14  ;;  %v4852_v18 = vcombine.high %v2477_v8, %v2481_v24 }
 0x1c9   :  { %2415 = vmatpush1.bf16.msra.mxu0 %v5581_v20  ;;  %v2489_v20 = vld [vmem:[%s7741_s5 + $0x170] sm:$0xff] }
 0x1ca   :  { %2416 = vmatprep.subr.bf16.mxu0 %v5586_v26  ;;  %v4860_v23 = vcombine.high %v2485_v19, %v2489_v20  ;;  %v2497_v26 = vld [vmem:[%s7741_s5 + $0x1b0] sm:$0xff]  ;;  %v4859_v16 = vcombine.low %v2485_v19, %v2489_v20 }
 0x1cb   :  { %v4867_v36 = vcombine.low %v2493_v25, %v2497_v26 }
 0x1cd   :  { %2417 = vmatpush1.bf16.msra.mxu0 %v5584_v27  ;;  %v4868_v27 = vcombine.high %v2493_v25, %v2497_v26 }
 0x1ce   :  { %2418 = vmatprep.subr.bf16.mxu0 %v5589_v29  ;;  %v4876_v29 = vcombine.high %v2501_v11, %v2505_v52 }
 0x1d1   :  { %2419 = vmatpush1.bf16.msra.mxu0 %v5587_v31  ;;  %v2513_v31 = vld [vmem:[%s7741_s5 + $0x230] sm:$0xff] }
 0x1d2   :  { %2420 = vmatprep.subr.bf16.mxu0 %v5592_v35  ;;  %v4884_v33 = vcombine.high %v2509_v30, %v2513_v31  ;;  %v2521_v35 = vld [vmem:[%s7741_s5 + $0x270] sm:$0xff]  ;;  %v4883_v37 = vcombine.low %v2509_v30, %v2513_v31 }
 0x1d3   :  { %v4891_v41 = vcombine.low %v2517_v34, %v2521_v35 }
 0x1d5   :  { %2421 = vmatpush1.bf16.msra.mxu0 %v5590_v38  ;;  %v4892_v38 = vcombine.high %v2517_v34, %v2521_v35  ;;  %v2460_v34 = vld [vmem:[%s7741_s5 + $0x88] sm:$0xff] }
 0x1d6   :  { %2422 = vmatprep.subr.bf16.mxu0 %v5595_v42  ;;  %v4900_v42 = vcombine.high %v2525_v39, %v2529_v40  ;;  %v2464_v35 = vld [vmem:[%s7741_s5 + $0xa8] sm:$0xff] }
 0x1d7   :  { %v5599_v39 = vld [vmem:[%s7743_s7] ss:$8 sps:$4 sm:$0xff]   ;;  %v4834_v40 = vcombine.high %v2460_v34, %v2464_v35 }
 0x1d9   :  { %2423 = vmatpush1.bf16.msra.mxu0 %v5593_v44  ;;  %v2537_v44 = vld [vmem:[%s7741_s5 + $0x2f0] sm:$0xff] }
 0x1da   :  { %2424 = vmatprep.subr.bf16.mxu0 %v5598_v46  ;;  %v4908_v46 = vcombine.high %v2533_v43, %v2537_v44 }
 0x1dd   :  { %2425 = vmatpush1.bf16.msra.mxu0 %v5596_v47  ;;  %v2541_v47 = vld [vmem:[%s7741_s5 + $0x310] sm:$0xff] }
 0x1de   :  { %3335 = vmatprep.subr.bf16.mxu0 %v4820_v48  ;;  %v2545_v48 = vld [vmem:[%s7741_s5 + $0x330] sm:$0xff] }
 0x215   :  { %v1934_v54 = vpop.f32.mrb[4].mxu1 }
 0x216   :  { %v5078_v55 = vadd.f32 %v1934_v54, %v324_v51  ;;  %v1936_v56 = vpop.f32.mrb[5].mxu1  ;;  %v4907_v51 = vcombine.low %v2533_v43, %v2537_v44  ;;  %v2549_v54 = vld [vmem:[%s7741_s5 + $0x350] sm:$0xff]  ;;  %v4833_v44 = vcombine.low %v2460_v34, %v2464_v35  ;;  %v5631_v35 = vld [vmem:[%s7743_s7 + $0xa4] ss:$8 sps:$4 sm:$0xff]  }
 0x217   :  { %v5079_v57 = vadd.f32 %v1936_v56, %v328_v53  ;;  %v1938_v58 = vpop.f32.mrb[6].mxu1  ;;  %v4916_v53 = vcombine.high %v2541_v47, %v2545_v48  ;;  %v4915_v56 = vcombine.low %v2541_v47, %v2545_v48  ;;  %v5604_v43 = vld [vmem:[%s7743_s7 + $0x14] ss:$8 sps:$4 sm:$0xff]   ;;  %v5607_v47 = vld [vmem:[%s7743_s7 + $0x24] ss:$8 sps:$4 sm:$0xff]  }
 0x218   :  { %vm1943_vm2 = vcmp.ge.f32.partialorder %v5078_v55, 0.0  ;;  %v1947_v59 = vmul.f32 0.01, %v5078_v55  ;;  %v1939_v0 = vpop.f32.mrb[7].mxu1  ;;  %v2476_v48 = vld [vmem:[%s7741_s5 + $0x108] sm:$0xff] }
 0x219   :  { %vm1944_vm3 = vcmp.ge.f32.partialorder %v5079_v57, 0.0  ;;  %v1948_v22 = vmul.f32 0.01, %v5079_v57  ;;  %v2559_v0 = vld [vmem:[%s7741_s5 + $0x3a0] sm:$0xff]  ;;  %v5626_v34 = vld [vmem:[%s7743_s7 + $0x90] ss:$8 sps:$4 sm:$0xff]  }
 0x21a   :  { %v1951_v1 = vsel %vm1943_vm2, %v5078_v55, %v1947_v59  ;;  %v2553_v55 = vld [vmem:[%s7741_s5 + $0x370] sm:$0xff]  ;;  %v2555_v59 = vld [vmem:[%s7741_s5 + $0x380] sm:$0xff] }
 0x21b   :  { %v1952_v62 = vsel %vm1944_vm3, %v5079_v57, %v1948_v22  ;;  %v1955_v5 = vpack.c.bf16 %v1951_v1, %v1951_v1  ;;  %v4924_v57 = vcombine.high %v2549_v54, %v2553_v55  ;;  %v4923_v58 = vcombine.low %v2549_v54, %v2553_v55  ;;  %v2557_v1 = vld [vmem:[%s7741_s5 + $0x390] sm:$0xff]  ;;  %v5605_v54 = vld [vmem:[%s7743_s7 + $0x20] ss:$8 sps:$4 sm:$0xff]  }
 0x21c   :  { %v1956_v4 = vpack.c.bf16 %v1952_v62, %v1952_v62  ;;  %v4928_v22 = vcombine.high %v2555_v59, %v2559_v0  ;;  %v4927_v3 = vcombine.low %v2555_v59, %v2559_v0  ;;  %v4932_v62 = vcombine.high %v2557_v1, %v2561_v2  ;;  %v5608_v0 = vld [vmem:[%s7743_s7 + $0x30] ss:$8 sps:$4 sm:$0xff]  }
 0x21d   :  { %vm4429_vm3 = vcmask 588800  }
 0x21e   :  { %2426 = vmatprep.mubr.bf16.mxu0 %v1956_v4  ;;  %3281 = vmatprep.subr.bf16.mxu1 %v4928_v22  ;;  %v4931_v4 = vcombine.low %v2557_v1, %v2561_v2  ;;  %v5613_v1 = vld [vmem:[%s7743_s7 + $0x44] ss:$8 sps:$4 sm:$0xff]  }
 0x21f   :  { %2427 = vmatmul.mubr.bf16.vlgmr.msra.gmra.mrb[4].mxu0 %v1955_v5  ;;  %3282 = vmatpush1.bf16.msra.mxu1 %v4927_v3  ;;  %v2563_v5 = vld [vmem:[%s7741_s5 + $0x3c0] sm:$0xff]  ;;  %v2492_v2 = vld [vmem:[%s7741_s5 + $0x188] sm:$0xff] }
 0x220   :  { %3336 = vmatpush1.bf16.msra.mxu0 %v4819_v28  ;;  %v4843_v28 = vcombine.low %v2469_v13, %v2473_v14  ;;  %v2496_v3 = vld [vmem:[%s7741_s5 + $0x1a8] sm:$0xff] }
 0x221   :  { %3337 = vmatprep.subr.bf16.mxu0 %v4828_v6  ;;  %v2567_v6 = vld [vmem:[%s7741_s5 + $0x3e0] sm:$0xff] }
 0x222   :  { %v4936_v7 = vcombine.high %v2563_v5, %v2567_v6 }
 0x224   :  { %3338 = vmatpush1.bf16.msra.mxu0 %v4827_v10  ;;  %v2569_v10 = vld [vmem:[%s7741_s5 + $0x3f0] sm:$0xff]  ;;  %3283 = vmatprep.subr.bf16.mxu1 %v4936_v7  ;;  %v2500_v7 = vld [vmem:[%s7741_s5 + $0x1c8] sm:$0xff] }
 0x225   :  { %3339 = vmatprep.subr.bf16.mxu0 %v4836_v12  ;;  %v4935_v12 = vcombine.low %v2563_v5, %v2567_v6  ;;  %v4940_v13 = vcombine.high %v2565_v9, %v2569_v10  ;;  %v4939_v14 = vcombine.low %v2565_v9, %v2569_v10  ;;  %v4866_v5 = vcombine.high %v2492_v2, %v2496_v3  ;;  %v5616_v6 = vld [vmem:[%s7743_s7 + $0x54] ss:$8 sps:$4 sm:$0xff]   ;;  %v2504_v9 = vld [vmem:[%s7741_s5 + $0x1e8] sm:$0xff]  ;;  %v5614_v10 = vld [vmem:[%s7743_s7 + $0x50] ss:$8 sps:$4 sm:$0xff]  }
 0x227   :  { %3284 = vmatpush1.bf16.msra.mxu1 %v4935_v12  ;;  %v5619_v12 = vld [vmem:[%s7743_s7 + $0x64] ss:$8 sps:$4 sm:$0xff]  }
 0x228   :  { %3340 = vmatpush1.bf16.msra.mxu0 %v4835_v15  ;;  %v2444_v15 = vld [vmem:[%s7741_s5 + $0x8] sm:$0xff] }
 0x229   :  { %3341 = vmatprep.subr.bf16.mxu0 %v4844_v17  ;;  %v2448_v17 = vld [vmem:[%s7741_s5 + $0x28] sm:$0xff] }
 0x22a   :  { %v4818_v8 = vcombine.high %v2444_v15, %v2448_v17  ;;  %v4817_v24 = vcombine.low %v2444_v15, %v2448_v17  ;;  %v2512_v15 = vld [vmem:[%s7741_s5 + $0x228] sm:$0xff]  ;;  %v4874_v17 = vcombine.high %v2500_v7, %v2504_v9 }
 0x22c   :  { %3342 = vmatpush1.bf16.msra.mxu0 %v4843_v28  ;;  %3294 = vmatprep.subr.bf16.mxu1 %v4818_v8  ;;  %v2021_v28 = vld [vmem:[%s7742_s4] sm:$0x3] }
 0x22d   :  { %3343 = vmatprep.subr.bf16.mxu0 %v4852_v18  ;;  %v2026_v18 = vrot.slane %v2021_v28, %v6775_v61  ;;  %v2030_v19 = vrot.slane %v2021_v28, %v6783_v63  ;;  %v5617_v8 = vld [vmem:[%s7743_s7 + $0x60] ss:$8 sps:$4 sm:$0xff]   ;;  %v4873_v28 = vcombine.low %v2500_v7, %v2504_v9  ;;  %v2454_v7 = vld [vmem:[%s7741_s5 + $0x58] sm:$0xff] }
 0x22e   :  { %v2458_v9 = vld [vmem:[%s7741_s5 + $0x78] sm:$0xff] }
 0x230   :  { %3344 = vmatpush1.bf16.msra.mxu0 %v4851_v21 }
 0x231   :  { %3345 = vmatprep.subr.bf16.mxu0 %v4860_v23 }
 0x234   :  { %3346 = vmatpush1.bf16.msra.mxu0 %v4859_v16 }
 0x235   :  { %3347 = vmatprep.subr.bf16.mxu0 %v4868_v27 }
 0x238   :  { %3348 = vmatpush1.bf16.msra.mxu0 %v4867_v36  ;;  %v2452_v36 = vld [vmem:[%s7741_s5 + $0x48] sm:$0xff] }
 0x239   :  { %3349 = vmatprep.subr.bf16.mxu0 %v4876_v29  ;;  %v2456_v29 = vld [vmem:[%s7741_s5 + $0x68] sm:$0xff] }
 0x23c   :  { %3350 = vmatpush1.bf16.msra.mxu0 %v4875_v32 }
 0x23d   :  { %3351 = vmatprep.subr.bf16.mxu0 %v4884_v33  ;;  %v4826_v33 = vcombine.high %v2452_v36, %v2456_v29 }
 0x240   :  { %3352 = vmatpush1.bf16.msra.mxu0 %v4883_v37  ;;  %v4825_v37 = vcombine.low %v2452_v36, %v2456_v29  ;;  %v2532_v29 = vld [vmem:[%s7741_s5 + $0x2c8] sm:$0xff] }
 0x241   :  { %3353 = vmatprep.subr.bf16.mxu0 %v4892_v38  ;;  %v2468_v38 = vld [vmem:[%s7741_s5 + $0xc8] sm:$0xff] }
 0x244   :  { %3354 = vmatpush1.bf16.msra.mxu0 %v4891_v41  ;;  %v5601_v41 = vld [vmem:[%s7743_s7 + $0x4] ss:$8 sps:$4 sm:$0xff]  }
 0x245   :  { %3355 = vmatprep.subr.bf16.mxu0 %v4900_v42  ;;  %v2472_v42 = vld [vmem:[%s7741_s5 + $0xe8] sm:$0xff] }
 0x248   :  { %3356 = vmatpush1.bf16.msra.mxu0 %v4899_v45  ;;  %v5602_v45 = vld [vmem:[%s7743_s7 + $0x10] ss:$8 sps:$4 sm:$0xff]  }
 0x249   :  { %3357 = vmatprep.subr.bf16.mxu0 %v4908_v46  ;;  %v4842_v46 = vcombine.high %v2468_v38, %v2472_v42 }
 0x24c   :  { %3358 = vmatpush1.bf16.msra.mxu0 %v4907_v51  ;;  %v2480_v51 = vld [vmem:[%s7741_s5 + $0x128] sm:$0xff] }
 0x24d   :  { %3359 = vmatprep.subr.bf16.mxu0 %v4916_v53  ;;  %v4841_v53 = vcombine.low %v2468_v38, %v2472_v42  ;;  %v4850_v55 = vcombine.high %v2476_v48, %v2480_v51  ;;  %v4849_v59 = vcombine.low %v2476_v48, %v2480_v51  ;;  %v2540_v38 = vld [vmem:[%s7741_s5 + $0x308] sm:$0xff]  ;;  %v5634_v42 = vld [vmem:[%s7743_s7 + $0xb4] ss:$8 sps:$4 sm:$0xff]  }
 0x24e   :  { %v5637_v48 = vld [vmem:[%s7743_s7 + $0xc4] ss:$8 sps:$4 sm:$0xff]  }
 0x250   :  { %3360 = vmatpush1.bf16.msra.mxu0 %v4915_v56  ;;  %v5610_v56 = vld [vmem:[%s7743_s7 + $0x34] ss:$8 sps:$4 sm:$0xff]  }
 0x251   :  { %3361 = vmatprep.subr.bf16.mxu0 %v4924_v57  ;;  %v2484_v57 = vld [vmem:[%s7741_s5 + $0x148] sm:$0xff] }
 0x254   :  { %3362 = vmatpush1.bf16.msra.mxu0 %v4923_v58  ;;  %v2488_v58 = vld [vmem:[%s7741_s5 + $0x168] sm:$0xff] }
 0x255   :  { %3363 = vmatprep.subr.bf16.mxu0 %v4932_v62  ;;  %v4858_v22 = vcombine.high %v2484_v57, %v2488_v58  ;;  %v4857_v62 = vcombine.low %v2484_v57, %v2488_v58  ;;  %v5635_v57 = vld [vmem:[%s7743_s7 + $0xc0] ss:$8 sps:$4 sm:$0xff]  }
 0x258   :  { %3364 = vmatpush1.bf16.msra.mxu0 %v4931_v4  ;;  %v5611_v4 = vld [vmem:[%s7743_s7 + $0x40] ss:$8 sps:$4 sm:$0xff]  }
 0x259   :  { %3365 = vmatprep.subr.bf16.mxu0 %v4940_v13  ;;  %v4865_v13 = vcombine.low %v2492_v2, %v2496_v3  ;;  %v5638_v2 = vld [vmem:[%s7743_s7 + $0xd0] ss:$8 sps:$4 sm:$0xff]  }
 0x25c   :  { %3366 = vmatpush1.bf16.msra.mxu0 %v4939_v14  ;;  %v2508_v14 = vld [vmem:[%s7741_s5 + $0x208] sm:$0xff] }
 0x25d   :  { %4150 = vmatprep.subr.bf16.mxu0 %v5601_v41  ;;  %v5629_v41 = vld [vmem:[%s7743_s7 + $0xa0] ss:$8 sps:$4 sm:$0xff]  }
 0x2f2   :  { %v2428_v20 = vpop.f32.mrb[4].mxu0 }
 0x2f3   :  { %v5080_v21 = vadd.f32 %v2428_v20, %v2026_v18  ;;  %v2430_v23 = vpop.f32.mrb[5].mxu0  ;;  %v2516_v18 = vld [vmem:[%s7741_s5 + $0x248] sm:$0xff]  ;;  %v4882_v20 = vcombine.high %v2508_v14, %v2512_v15 }
 0x2f4   :  { %v5081_v25 = vadd.f32 %v2430_v23, %v2030_v19  ;;  %v2432_v26 = vpop.f32.mrb[6].mxu0  ;;  %v2520_v19 = vld [vmem:[%s7741_s5 + $0x268] sm:$0xff] }
 0x2f5   :  { %vm2435_vm4 = vcmp.ge.f32.partialorder %v5080_v21, 0.0  ;;  %v2437_v16 = vmul.f32 0.01, %v5080_v21  ;;  %v2433_v27 = vpop.f32.mrb[7].mxu0  ;;  %v5625_v23 = vld [vmem:[%s7743_s7 + $0x84] ss:$8 sps:$4 sm:$0xff]   ;;  %v4889_v36 = vcombine.low %v2516_v18, %v2520_v19 }
 0x2f6   :  { %vm2436_vm5 = vcmp.ge.f32.partialorder %v5081_v25, 0.0  ;;  %v2438_v11 = vmul.f32 0.01, %v5081_v25  ;;  %v2524_v26 = vld [vmem:[%s7741_s5 + $0x288] sm:$0xff]  ;;  %v4890_v27 = vcombine.high %v2516_v18, %v2520_v19  ;;  %v2478_v19 = vld [vmem:[%s7741_s5 + $0x118] sm:$0xff] }
 0x2f7   :  { %v2439_v52 = vsel %vm2435_vm4, %v5080_v21, %v2437_v16  ;;  %v5620_v21 = vld [vmem:[%s7743_s7 + $0x70] ss:$8 sps:$4 sm:$0xff]   ;;  %v2528_v16 = vld [vmem:[%s7741_s5 + $0x2a8] sm:$0xff]  ;;  %vm4477_vm4 = vcmask 87040  }
 0x2f8   :  { %v2440_v30 = vsel %vm2436_vm5, %v5081_v25, %v2438_v11  ;;  %v7113_v32 = vpack.c.bf16 %v2439_v52, %v2439_v52  ;;  %v4881_v25 = vcombine.low %v2508_v14, %v2512_v15  ;;  %v5623_v11 = vld [vmem:[%s7743_s7 + $0x80] ss:$8 sps:$4 sm:$0xff]   ;;  %v5628_v52 = vld [vmem:[%s7743_s7 + $0x94] ss:$8 sps:$4 sm:$0xff]   ;;  %v4829_v15 = vcombine.low %v2454_v7, %v2458_v9 }
 0x2f9   :  { %v7111_v31 = vpack.c.bf16 %v2440_v30, %v2440_v30  ;;  %v2536_v30 = vld [vmem:[%s7741_s5 + $0x2e8] sm:$0xff]  ;;  %v2466_v14 = vld [vmem:[%s7741_s5 + $0xb8] sm:$0xff] }
 0x2fb   :  { %3285 = vmatprep.mubr.bf16.mxu1 %v7111_v31  ;;  %3367 = vmatprep.mubr.bf16.mxu0 %v7111_v31 }
 0x2fc   :  { %3286 = vmatmul.mubr.bf16.vlgmr.msra.gmra.mrb[8].mxu1 %v7113_v32  ;;  %3368 = vmatmul.mubr.bf16.vlgmr.msra.gmra.mrb[8].mxu0 %v7113_v32 }
 0x2fd   :  { %3295 = vmatpush1.bf16.msra.mxu1 %v4817_v24  ;;  %3326 = vmatprep.mubr.bf16.mxu1 %v7111_v31  ;;  %v5622_v24 = vld [vmem:[%s7743_s7 + $0x74] ss:$8 sps:$4 sm:$0xff]  }
 0x2fe   :  { %3296 = vmatprep.subr.bf16.mxu1 %v4826_v33  ;;  %4151 = vmatpush1.bf16.msra.mxu0 %v5599_v39  ;;  %v4898_v33 = vcombine.high %v2524_v26, %v2528_v16  ;;  %v2544_v39 = vld [vmem:[%s7741_s5 + $0x328] sm:$0xff] }
 0x2ff   :  { %4152 = vmatprep.subr.bf16.mxu0 %v5604_v43  ;;  %v4905_v43 = vcombine.low %v2532_v29, %v2536_v30  ;;  %v4913_v51 = vcombine.low %v2540_v38, %v2544_v39 }
 0x301   :  { %3297 = vmatpush1.bf16.msra.mxu1 %v4825_v37  ;;  %v4897_v37 = vcombine.low %v2524_v26, %v2528_v16 }
 0x302   :  { %3298 = vmatprep.subr.bf16.mxu1 %v4834_v40  ;;  %4153 = vmatpush1.bf16.msra.mxu0 %v5602_v45  ;;  %v4906_v40 = vcombine.high %v2532_v29, %v2536_v30  ;;  %v2552_v45 = vld [vmem:[%s7741_s5 + $0x368] sm:$0xff]  ;;  %v2502_v29 = vld [vmem:[%s7741_s5 + $0x1d8] sm:$0xff] }
 0x303   :  { %4154 = vmatprep.subr.bf16.mxu0 %v5607_v47  ;;  %v5632_v47 = vld [vmem:[%s7743_s7 + $0xb0] ss:$8 sps:$4 sm:$0xff]  }
 0x304   :  { %v2506_v30 = vld [vmem:[%s7741_s5 + $0x1f8] sm:$0xff] }
 0x305   :  { %3299 = vmatpush1.bf16.msra.mxu1 %v4833_v44  ;;  %v2548_v44 = vld [vmem:[%s7741_s5 + $0x348] sm:$0xff] }
 0x306   :  { %3300 = vmatprep.subr.bf16.mxu1 %v4842_v46  ;;  %4155 = vmatpush1.bf16.msra.mxu0 %v5605_v54  ;;  %v4914_v46 = vcombine.high %v2540_v38, %v2544_v39  ;;  %v2560_v54 = vld [vmem:[%s7741_s5 + $0x3a8] sm:$0xff]  ;;  %v2510_v38 = vld [vmem:[%s7741_s5 + $0x218] sm:$0xff] }
 0x307   :  { %4156 = vmatprep.subr.bf16.mxu0 %v5610_v56  ;;  %v4921_v56 = vcombine.low %v2548_v44, %v2552_v45  ;;  %v2514_v39 = vld [vmem:[%s7741_s5 + $0x238] sm:$0xff] }
 0x309   :  { %3301 = vmatpush1.bf16.msra.mxu1 %v4841_v53  ;;  %v2556_v53 = vld [vmem:[%s7741_s5 + $0x388] sm:$0xff] }
 0x30a   :  { %3302 = vmatprep.subr.bf16.mxu1 %v4850_v55  ;;  %4157 = vmatpush1.bf16.msra.mxu0 %v5608_v0  ;;  %v4922_v55 = vcombine.high %v2548_v44, %v2552_v45  ;;  %v4930_v58 = vcombine.high %v2556_v53, %v2560_v54  ;;  %v2564_v0 = vld [vmem:[%s7741_s5 + $0x3c8] sm:$0xff]  ;;  %v2518_v44 = vld [vmem:[%s7741_s5 + $0x258] sm:$0xff] }
 0x30b   :  { %4158 = vmatprep.subr.bf16.mxu0 %v5613_v1  ;;  %v4929_v1 = vcombine.low %v2556_v53, %v2560_v54  ;;  %v2522_v45 = vld [vmem:[%s7741_s5 + $0x278] sm:$0xff] }
 0x30c   :  { %v2530_v53 = vld [vmem:[%s7741_s5 + $0x2b8] sm:$0xff]  ;;  %v4893_v54 = vcombine.low %v2518_v44, %v2522_v45 }
 0x30d   :  { %3303 = vmatpush1.bf16.msra.mxu1 %v4849_v59  ;;  %v5640_v59 = vld [vmem:[%s7743_s7 + $0xd4] ss:$8 sps:$4 sm:$0xff]  }
 0x30e   :  { %3304 = vmatprep.subr.bf16.mxu1 %v4858_v22  ;;  %4159 = vmatpush1.bf16.msra.mxu0 %v5611_v4  ;;  %v2568_v22 = vld [vmem:[%s7741_s5 + $0x3e8] sm:$0xff]  ;;  %v2450_v4 = vld [vmem:[%s7741_s5 + $0x38] sm:$0xff] }
 0x30f   :  { %4160 = vmatprep.subr.bf16.mxu0 %v5616_v6  ;;  %v4938_v3 = vcombine.high %v2564_v0, %v2568_v22 }
 0x311   :  { %3305 = vmatpush1.bf16.msra.mxu1 %v4857_v62  ;;  %v2446_v62 = vld [vmem:[%s7741_s5 + $0x18] sm:$0xff] }
 0x312   :  { %3306 = vmatprep.subr.bf16.mxu1 %v4866_v5  ;;  %4161 = vmatpush1.bf16.msra.mxu0 %v5614_v10  ;;  %v4937_v5 = vcombine.low %v2564_v0, %v2568_v22  ;;  %v4822_v6 = vcombine.high %v2446_v62, %v2450_v4  ;;  %v4821_v10 = vcombine.low %v2446_v62, %v2450_v4  ;;  %v2542_v0 = vld [vmem:[%s7741_s5 + $0x318] sm:$0xff] }
 0x313   :  { %4162 = vmatprep.subr.bf16.mxu0 %v5619_v12  ;;  %v4830_v12 = vcombine.high %v2454_v7, %v2458_v9  ;;  %v2546_v22 = vld [vmem:[%s7741_s5 + $0x338] sm:$0xff] }
 0x314   :  { %v2554_v62 = vld [vmem:[%s7741_s5 + $0x378] sm:$0xff]  ;;  %v4917_v4 = vcombine.low %v2542_v0, %v2546_v22 }
 0x315   :  { %3307 = vmatpush1.bf16.msra.mxu1 %v4865_v13  ;;  %v2462_v13 = vld [vmem:[%s7741_s5 + $0x98] sm:$0xff] }
 0x316   :  { %3308 = vmatprep.subr.bf16.mxu1 %v4874_v17  ;;  %4163 = vmatpush1.bf16.msra.mxu0 %v5617_v8  ;;  %v4838_v17 = vcombine.high %v2462_v13, %v2466_v14  ;;  %v2470_v8 = vld [vmem:[%s7741_s5 + $0xd8] sm:$0xff] }
 0x317   :  { %4164 = vmatprep.subr.bf16.mxu0 %v5622_v24  ;;  %v2474_v24 = vld [vmem:[%s7741_s5 + $0xf8] sm:$0xff] }
 0x318   :  { %v4846_v18 = vcombine.high %v2470_v8, %v2474_v24  ;;  %v2562_v7 = vld [vmem:[%s7741_s5 + $0x3b8] sm:$0xff] }
 0x319   :  { %3309 = vmatpush1.bf16.msra.mxu1 %v4873_v28  ;;  %v4837_v28 = vcombine.low %v2462_v13, %v2466_v14  ;;  %v2570_v13 = vld [vmem:[%s7741_s5 + $0x3f8] sm:$0xff] }
 0x31a   :  { %3310 = vmatprep.subr.bf16.mxu1 %v4882_v20  ;;  %4165 = vmatpush1.bf16.msra.mxu0 %v5620_v21  ;;  %v4845_v20 = vcombine.low %v2470_v8, %v2474_v24  ;;  %v5719_v8 = vld [vmem:[%s7743_s7 + $0x300] ss:$8 sps:$4 sm:$0xff]   ;;  %v5721_v24 = vld [vmem:[%s7743_s7 + $0x304] ss:$8 sps:$4 sm:$0xff]  }
 0x31b   :  { %4166 = vmatprep.subr.bf16.mxu0 %v5625_v23  ;;  %v2486_v23 = vld [vmem:[%s7741_s5 + $0x158] sm:$0xff] }
 0x31d   :  { %3311 = vmatpush1.bf16.msra.mxu1 %v4881_v25  ;;  %v2490_v25 = vld [vmem:[%s7741_s5 + $0x178] sm:$0xff] }
 0x31e   :  { %3312 = vmatprep.subr.bf16.mxu1 %v4890_v27  ;;  %4167 = vmatpush1.bf16.msra.mxu0 %v5623_v11  ;;  %v4862_v16 = vcombine.high %v2486_v23, %v2490_v25  ;;  %v2494_v27 = vld [vmem:[%s7741_s5 + $0x198] sm:$0xff] }
 0x31f   :  { %4168 = vmatprep.subr.bf16.mxu0 %v5628_v52  ;;  %v2498_v11 = vld [vmem:[%s7741_s5 + $0x1b8] sm:$0xff]  ;;  %v4861_v52 = vcombine.low %v2486_v23, %v2490_v25  ;;  %v5745_v23 = vld [vmem:[%s7743_s7 + $0x344] ss:$8 sps:$4 sm:$0xff]  }
 0x320   :  { %v5749_v25 = vld [vmem:[%s7743_s7 + $0x350] ss:$8 sps:$4 sm:$0xff]  }
 0x321   :  { %3313 = vmatpush1.bf16.msra.mxu1 %v4889_v36  ;;  %v4870_v36 = vcombine.high %v2494_v27, %v2498_v11 }
 0x322   :  { %3314 = vmatprep.subr.bf16.mxu1 %v4898_v33  ;;  %4169 = vmatpush1.bf16.msra.mxu0 %v5626_v34  ;;  %v5643_v33 = vld [vmem:[%s7743_s7 + $0xe4] ss:$8 sps:$4 sm:$0xff]   ;;  %v5641_v34 = vld [vmem:[%s7743_s7 + $0xe0] ss:$8 sps:$4 sm:$0xff]  }
 0x323   :  { %4170 = vmatprep.subr.bf16.mxu0 %v5631_v35  ;;  %v4869_v35 = vcombine.low %v2494_v27, %v2498_v11  ;;  %v5755_v27 = vld [vmem:[%s7743_s7 + $0x360] ss:$8 sps:$4 sm:$0xff]   ;;  %v5757_v11 = vld [vmem:[%s7743_s7 + $0x364] ss:$8 sps:$4 sm:$0xff]  }
 0x325   :  { %3315 = vmatpush1.bf16.msra.mxu1 %v4897_v37  ;;  %v4878_v37 = vcombine.high %v2502_v29, %v2506_v30 }
 0x326   :  { %3316 = vmatprep.subr.bf16.mxu1 %v4906_v40  ;;  %4171 = vmatpush1.bf16.msra.mxu0 %v5629_v41  ;;  %v5646_v40 = vld [vmem:[%s7743_s7 + $0xf4] ss:$8 sps:$4 sm:$0xff]   ;;  %v4877_v41 = vcombine.low %v2502_v29, %v2506_v30 }
 0x327   :  { %4172 = vmatprep.subr.bf16.mxu0 %v5634_v42  ;;  %v5644_v42 = vld [vmem:[%s7743_s7 + $0xf0] ss:$8 sps:$4 sm:$0xff]  }
 0x329   :  { %3317 = vmatpush1.bf16.msra.mxu1 %v4905_v43  ;;  %v4886_v43 = vcombine.high %v2510_v38, %v2514_v39 }
 0x32a   :  { %3318 = vmatprep.subr.bf16.mxu1 %v4914_v46  ;;  %4173 = vmatpush1.bf16.msra.mxu0 %v5632_v47  ;;  %v5649_v46 = vld [vmem:[%s7743_s7 + $0x104] ss:$8 sps:$4 sm:$0xff]   ;;  %v4885_v47 = vcombine.low %v2510_v38, %v2514_v39 }
 0x32b   :  { %4174 = vmatprep.subr.bf16.mxu0 %v5637_v48  ;;  %v4894_v48 = vcombine.high %v2518_v44, %v2522_v45 }
 0x32d   :  { %3319 = vmatpush1.bf16.msra.mxu1 %v4913_v51  ;;  %v2526_v51 = vld [vmem:[%s7741_s5 + $0x298] sm:$0xff] }
 0x32e   :  { %3320 = vmatprep.subr.bf16.mxu1 %v4922_v55  ;;  %4175 = vmatpush1.bf16.msra.mxu0 %v5635_v57  ;;  %v4902_v55 = vcombine.high %v2526_v51, %v2530_v53  ;;  %v2538_v57 = vld [vmem:[%s7741_s5 + $0x2f8] sm:$0xff] }
 0x32f   :  { %4176 = vmatprep.subr.bf16.mxu0 %v5640_v59 }
 0x331   :  { %3321 = vmatpush1.bf16.msra.mxu1 %v4921_v56  ;;  %v2534_v56 = vld [vmem:[%s7741_s5 + $0x2d8] sm:$0xff] }
 0x332   :  { %3322 = vmatprep.subr.bf16.mxu1 %v4930_v58  ;;  %4177 = vmatpush1.bf16.msra.mxu0 %v5638_v2  ;;  %v4901_v58 = vcombine.low %v2526_v51, %v2530_v53  ;;  %v4910_v59 = vcombine.high %v2534_v56, %v2538_v57  ;;  %v4918_v2 = vcombine.high %v2542_v0, %v2546_v22  ;;  %v5647_v53 = vld [vmem:[%s7743_s7 + $0x100] ss:$8 sps:$4 sm:$0xff]   ;;  %v5655_v0 = vld [vmem:[%s7743_s7 + $0x124] ss:$8 sps:$4 sm:$0xff]   ;;  %v5786_v22 = vmov 0  }
 0x333   :  { %4178 = vmatprep.subr.bf16.mxu0 %v5643_v33 }
 0x335   :  { %3323 = vmatpush1.bf16.msra.mxu1 %v4929_v1  ;;  %v4909_v1 = vcombine.low %v2534_v56, %v2538_v57  ;;  %v5652_v56 = vld [vmem:[%s7743_s7 + $0x114] ss:$8 sps:$4 sm:$0xff]  }
 0x336   :  { %3324 = vmatprep.subr.bf16.mxu1 %v4938_v3  ;;  %4179 = vmatpush1.bf16.msra.mxu0 %v5641_v34  ;;  %v2550_v3 = vld [vmem:[%s7741_s5 + $0x358] sm:$0xff] }
 0x337   :  { %4180 = vmatprep.subr.bf16.mxu0 %v5646_v40  ;;  %v4925_v9 = vcombine.low %v2550_v3, %v2554_v62 }
 0x339   :  { %3325 = vmatpush1.bf16.msra.mxu1 %v4937_v5  ;;  %v4926_v5 = vcombine.high %v2550_v3, %v2554_v62  ;;  %v5656_v3 = vld [vmem:[%s7743_s7 + $0x130] ss:$8 sps:$4 sm:$0xff]   ;;  %v5661_v62 = vld [vmem:[%s7743_s7 + $0x144] ss:$8 sps:$4 sm:$0xff]  }
 0x33a   :  { %3376 = vmatprep.subr.bf16.mxu1 %v4822_v6  ;;  %4181 = vmatpush1.bf16.msra.mxu0 %v5644_v42  ;;  %v2558_v6 = vld [vmem:[%s7741_s5 + $0x398] sm:$0xff] }
 0x33b   :  { %4191 = vmatprep.subr.bf16.mxu0 %v5649_v46  ;;  %v4933_v14 = vcombine.low %v2558_v6, %v2562_v7 }
 0x33c   :  { %3327 = vmatmul.mubr.bf16.vlgmr.msra.gmra.mrb[12].mxu1 %v7113_v32 }
 0x33d   :  { %3377 = vmatpush1.bf16.msra.mxu1 %v4821_v10  ;;  %3408 = vmatprep.mubr.bf16.mxu1 %v7111_v31  ;;  %v2482_v31 = vld [vmem:[%s7741_s5 + $0x138] sm:$0xff]  ;;  %v4934_v10 = vcombine.high %v2558_v6, %v2562_v7  ;;  %v5667_v7 = vld [vmem:[%s7743_s7 + $0x164] ss:$8 sps:$4 sm:$0xff]  }
 0x33e   :  { %3378 = vmatprep.subr.bf16.mxu1 %v4830_v12  ;;  %v4854_v21 = vcombine.high %v2478_v19, %v2482_v31  ;;  %v4853_v26 = vcombine.low %v2478_v19, %v2482_v31  ;;  %v2566_v12 = vld [vmem:[%s7741_s5 + $0x3d8] sm:$0xff]  ;;  %v5733_v19 = vld [vmem:[%s7743_s7 + $0x324] ss:$8 sps:$4 sm:$0xff]  }
 0x33f   :  { %v5737_v31 = vld [vmem:[%s7743_s7 + $0x330] ss:$8 sps:$4 sm:$0xff]  }
 0x340   :  { %v5662_v6 = vld [vmem:[%s7743_s7 + $0x150] ss:$8 sps:$4 sm:$0xff]  }
 0x341   :  { %3379 = vmatpush1.bf16.msra.mxu1 %v4829_v15  ;;  %v4942_v15 = vcombine.high %v2566_v12, %v2570_v13 }
 0x342   :  { %3380 = vmatprep.subr.bf16.mxu1 %v4838_v17  ;;  %v4941_v17 = vcombine.low %v2566_v12, %v2570_v13  ;;  %v5668_v12 = vld [vmem:[%s7743_s7 + $0x170] ss:$8 sps:$4 sm:$0xff]   ;;  %v5673_v13 = vld [vmem:[%s7743_s7 + $0x184] ss:$8 sps:$4 sm:$0xff]  }
 0x345   :  { %3381 = vmatpush1.bf16.msra.mxu1 %v4837_v28  ;;  %v5725_v28 = vld [vmem:[%s7743_s7 + $0x310] ss:$8 sps:$4 sm:$0xff]  }
 0x346   :  { %3382 = vmatprep.subr.bf16.mxu1 %v4846_v18  ;;  %v5727_v18 = vld [vmem:[%s7743_s7 + $0x314] ss:$8 sps:$4 sm:$0xff]  }
 0x349   :  { %3383 = vmatpush1.bf16.msra.mxu1 %v4845_v20  ;;  %v5739_v20 = vld [vmem:[%s7743_s7 + $0x334] ss:$8 sps:$4 sm:$0xff]  }
 0x34a   :  { %3384 = vmatprep.subr.bf16.mxu1 %v4854_v21  ;;  %v5743_v21 = vld [vmem:[%s7743_s7 + $0x340] ss:$8 sps:$4 sm:$0xff]  }
 0x34d   :  { %3385 = vmatpush1.bf16.msra.mxu1 %v4853_v26  ;;  %v5751_v26 = vld [vmem:[%s7743_s7 + $0x354] ss:$8 sps:$4 sm:$0xff]  }
 0x34e   :  { %3386 = vmatprep.subr.bf16.mxu1 %v4862_v16  ;;  %v7441_v16 = vld [vmem:[%s7744_s6] sm:$0xff] }
 0x351   :  { %3387 = vmatpush1.bf16.msra.mxu1 %v4861_v52  ;;  %v2576_v52 = vrot.slane %v7441_v16, %v6775_v61 }
 0x352   :  { %3388 = vmatprep.subr.bf16.mxu1 %v4870_v36  ;;  %v2580_v36 = vrot.slane %v7441_v16, %v6783_v63 }
 0x355   :  { %3389 = vmatpush1.bf16.msra.mxu1 %v4869_v35 }
 0x356   :  { %3390 = vmatprep.subr.bf16.mxu1 %v4878_v37  ;;  %v5763_v37 = vld [vmem:[%s7743_s7 + $0x374] ss:$8 sps:$4 sm:$0xff]  }
 0x359   :  { %3391 = vmatpush1.bf16.msra.mxu1 %v4877_v41  ;;  %v5761_v41 = vld [vmem:[%s7743_s7 + $0x370] ss:$8 sps:$4 sm:$0xff]  }
 0x35a   :  { %3392 = vmatprep.subr.bf16.mxu1 %v4886_v43 }
 0x35d   :  { %3393 = vmatpush1.bf16.msra.mxu1 %v4885_v47  ;;  %v3561_v47 = vld [vmem:[%s7743_s7 + $0x380] sm:$0x33] }
 0x35e   :  { %3394 = vmatprep.subr.bf16.mxu1 %v4894_v48  ;;  %v5055_v57 = vcombine.low %v3561_v47, %v3561_v47 }
 0x361   :  { %3395 = vmatpush1.bf16.msra.mxu1 %v4893_v54  ;;  %v5056_v54 = vcombine.high %v3561_v47, %v3561_v47 }
 0x362   :  { %3396 = vmatprep.subr.bf16.mxu1 %v4902_v55 }
 0x365   :  { %3397 = vmatpush1.bf16.msra.mxu1 %v4901_v58  ;;  %v4145_v58 = vsel %vm4143_vm8, %v5055_v57, 0  ;;  %v5704_v57 = vld [vmem:[%s7743_s7 + $0x230] ss:$8 sps:$4 sm:$0xff]  }
 0x366   :  { %3398 = vmatprep.subr.bf16.mxu1 %v4910_v59  ;;  %v5650_v59 = vld [vmem:[%s7743_s7 + $0x110] ss:$8 sps:$4 sm:$0xff]  }
 0x369   :  { %3399 = vmatpush1.bf16.msra.mxu1 %v4909_v1  ;;  %v5653_v1 = vld [vmem:[%s7743_s7 + $0x120] ss:$8 sps:$4 sm:$0xff]  }
 0x36a   :  { %3400 = vmatprep.subr.bf16.mxu1 %v4918_v2  ;;  %v5658_v2 = vld [vmem:[%s7743_s7 + $0x134] ss:$8 sps:$4 sm:$0xff]  }
 0x36d   :  { %3401 = vmatpush1.bf16.msra.mxu1 %v4917_v4  ;;  %v5659_v4 = vld [vmem:[%s7743_s7 + $0x140] ss:$8 sps:$4 sm:$0xff]  }
 0x36e   :  { %3402 = vmatprep.subr.bf16.mxu1 %v4926_v5  ;;  %v5664_v5 = vld [vmem:[%s7743_s7 + $0x154] ss:$8 sps:$4 sm:$0xff]  }
 0x371   :  { %3403 = vmatpush1.bf16.msra.mxu1 %v4925_v9  ;;  %v5665_v9 = vld [vmem:[%s7743_s7 + $0x160] ss:$8 sps:$4 sm:$0xff]  }
 0x372   :  { %3404 = vmatprep.subr.bf16.mxu1 %v4934_v10  ;;  %v5670_v10 = vld [vmem:[%s7743_s7 + $0x174] ss:$8 sps:$4 sm:$0xff]  }
 0x375   :  { %3405 = vmatpush1.bf16.msra.mxu1 %v4933_v14  ;;  %v5671_v14 = vld [vmem:[%s7743_s7 + $0x180] ss:$8 sps:$4 sm:$0xff]  }
 0x376   :  { %3406 = vmatprep.subr.bf16.mxu1 %v4942_v15  ;;  %v5676_v15 = vld [vmem:[%s7743_s7 + $0x194] ss:$8 sps:$4 sm:$0xff]  }
 0x379   :  { %3407 = vmatpush1.bf16.msra.mxu1 %v4941_v17  ;;  %v5674_v17 = vld [vmem:[%s7743_s7 + $0x190] ss:$8 sps:$4 sm:$0xff]  }
 0x37a   :  { %4273 = vmatprep.subr.bf16.mxu1 %v5721_v24  ;;  %v5677_v24 = vld [vmem:[%s7743_s7 + $0x1a0] ss:$8 sps:$4 sm:$0xff]  }
 0x37c   :  { %3409 = vmatmul.mubr.bf16.vlgmr.msra.gmra.mrb[16].mxu1 %v7113_v32  ;;  %v5731_v32 = vld [vmem:[%s7743_s7 + $0x320] ss:$8 sps:$4 sm:$0xff]  }
 0x37d   :  { %4274 = vmatpush1.bf16.msra.mxu1 %v5719_v8  ;;  %v5679_v8 = vld [vmem:[%s7743_s7 + $0x1a4] ss:$8 sps:$4 sm:$0xff]  }
 0x37e   :  { %4275 = vmatprep.subr.bf16.mxu1 %v5727_v18  ;;  %v5680_v18 = vld [vmem:[%s7743_s7 + $0x1b0] ss:$8 sps:$4 sm:$0xff]  }
 0x381   :  { %4276 = vmatpush1.bf16.msra.mxu1 %v5725_v28  ;;  %v5682_v28 = vld [vmem:[%s7743_s7 + $0x1b4] ss:$8 sps:$4 sm:$0xff]  }
 0x382   :  { %4277 = vmatprep.subr.bf16.mxu1 %v5733_v19  ;;  %v2595_v19 = vsub.s32 5, %v6772_v60 }
 0x385   :  { %4278 = vmatpush1.bf16.msra.mxu1 %v5731_v32  ;;  %v5685_v32 = vld [vmem:[%s7743_s7 + $0x1c4] ss:$8 sps:$4 sm:$0xff]  }
 0x386   :  { %4279 = vmatprep.subr.bf16.mxu1 %v5739_v20  ;;  %v5688_v20 = vld [vmem:[%s7743_s7 + $0x1d4] ss:$8 sps:$4 sm:$0xff]  }
 0x389   :  { %4280 = vmatpush1.bf16.msra.mxu1 %v5737_v31  ;;  %v5683_v31 = vld [vmem:[%s7743_s7 + $0x1c0] ss:$8 sps:$4 sm:$0xff]  }
 0x38a   :  { %4281 = vmatprep.subr.bf16.mxu1 %v5745_v23  ;;  %v5686_v23 = vld [vmem:[%s7743_s7 + $0x1d0] ss:$8 sps:$4 sm:$0xff]  }
 0x38d   :  { %4282 = vmatpush1.bf16.msra.mxu1 %v5743_v21  ;;  %v2596_v21 = vrot.slane %v7441_v16, %v2595_v19  ;;  %v5752_v19 = vld [vmem:[%s7743_s7 + $0x2d0] ss:$8 sps:$4 sm:$0xff]  }
 0x38e   :  { %4283 = vmatprep.subr.bf16.mxu1 %v5751_v26  ;;  %v2584_v26 = vrot.slane %v7441_v16, %v323_v49 }
 0x391   :  { %4284 = vmatpush1.bf16.msra.mxu1 %v5749_v25  ;;  %v5691_v25 = vld [vmem:[%s7743_s7 + $0x1e4] ss:$8 sps:$4 sm:$0xff]  }
 0x392   :  { %4285 = vmatprep.subr.bf16.mxu1 %v5757_v11  ;;  %v2588_v11 = vrot.slane %v7441_v16, %v327_v50  ;;  %v5692_v50 = vld [vmem:[%s7743_s7 + $0x1f0] ss:$8 sps:$4 sm:$0xff]  }
 0x395   :  { %4286 = vmatpush1.bf16.msra.mxu1 %v5755_v27 }
 0x396   :  { %4287 = vmatprep.subr.bf16.mxu1 %v5763_v37 }
 0x399   :  { %4288 = vmatpush1.bf16.msra.mxu1 %v5761_v41  ;;  %v5697_v41 = vld [vmem:[%s7743_s7 + $0x204] ss:$8 sps:$4 sm:$0xff]  }
 0x39a   :  { %5057 = vmatprep.subr.msk.bf16.mxu1 %vm4143_vm8, %v5056_v54  ;;  %v5703_v54 = vld [vmem:[%s7743_s7 + $0x224] ss:$8 sps:$4 sm:$0xff]  }
 0x39d   :  { %4290 = vmatpush1.bf16.msra.mxu1 %v4145_v58  ;;  %v5709_v58 = vld [vmem:[%s7743_s7 + $0x244] ss:$8 sps:$4 sm:$0xff]  }
 0x39e   :  { %4437 = vmatprep.subr.bf16.mxu1 %v5786_v22 }
 0x3cf   :  { %v3287_v29 = vpop.f32.mrb[8].mxu1  ;;  %v7453_v30 = vpop.f32.mrb[8].mxu0 }
 0x3d0   :  { %v3288_v33 = vadd.f32 %v3287_v29, %v2576_v52  ;;  %v3289_v34 = vpop.f32.mrb[9].mxu1  ;;  %v7455_v35 = vpop.f32.mrb[9].mxu0  ;;  %v5689_v52 = vld [vmem:[%s7743_s7 + $0x1e0] ss:$8 sps:$4 sm:$0xff]   ;;  %v5694_v29 = vld [vmem:[%s7743_s7 + $0x1f4] ss:$8 sps:$4 sm:$0xff]  }
 0x3d1   :  { %v3290_v38 = vadd.f32 %v3289_v34, %v2580_v36  ;;  %v3291_v39 = vpop.f32.mrb[10].mxu1  ;;  %v3373_v40 = vpop.f32.mrb[10].mxu0  ;;  %v3372_v27 = vadd.f32 %v7455_v35, %v2596_v21 }
 0x3d2   :  { %vm3417_vm6 = vcmp.ge.f32.partialorder %v3288_v33, 0.0  ;;  %v3425_v42 = vmul.f32 0.01, %v3288_v33  ;;  %v3292_v45 = vpop.f32.mrb[11].mxu1  ;;  %v3374_v46 = vpop.f32.mrb[11].mxu0 }
 0x3d3   :  { %vm3418_vm7 = vcmp.ge.f32.partialorder %v3290_v38, 0.0  ;;  %v3426_v43 = vmul.f32 0.01, %v3290_v38  ;;  %v3430_v49 = vmul.f32 0.01, %v3372_v27  ;;  %vm3422_vm9 = vcmp.ge.f32.partialorder %v3372_v27, 0.0 }
 0x3d4   :  { %v3433_v44 = vsel %vm3417_vm6, %v3288_v33, %v3425_v42  ;;  %v5695_v46 = vld [vmem:[%s7743_s7 + $0x200] ss:$8 sps:$4 sm:$0xff]  }
 0x3d5   :  { %v3434_v48 = vsel %vm3418_vm7, %v3290_v38, %v3426_v43  ;;  %v3441_v55 = vpack.c.bf16 %v3433_v44, %v3433_v44  ;;  %v3438_v44 = vsel %vm3422_vm9, %v3372_v27, %v3430_v49 }
 0x3d6   :  { %v3442_v51 = vpack.c.bf16 %v3434_v48, %v3434_v48  ;;  %v5700_v48 = vld [vmem:[%s7743_s7 + $0x214] ss:$8 sps:$4 sm:$0xff]  }
 0x3d8   :  { %4182 = vmatprep.mubr.bf16.mxu0 %v3442_v51  ;;  %v3446_v51 = vpack.c.bf16 %v3438_v44, %v3438_v44  ;;  %v5773_v44 = vld [vmem:[%s7745_s9 + $0x20] sm:$0xff]  }
 0x3d9   :  { %4183 = vmatmul.mubr.bf16.vlgmr.msra.gmra.mrb[12].mxu0 %v3441_v55  ;;  %v5701_v55 = vld [vmem:[%s7743_s7 + $0x220] ss:$8 sps:$4 sm:$0xff]  }
 0x3da   :  { %4192 = vmatpush1.bf16.msra.mxu0 %v5647_v53  ;;  %v5698_v53 = vld [vmem:[%s7743_s7 + $0x210] ss:$8 sps:$4 sm:$0xff]  }
 0x3db   :  { %4193 = vmatprep.subr.bf16.mxu0 %v5652_v56  ;;  %v5706_v56 = vld [vmem:[%s7743_s7 + $0x234] ss:$8 sps:$4 sm:$0xff]  }
 0x3de   :  { %4194 = vmatpush1.bf16.msra.mxu0 %v5650_v59  ;;  %v5707_v59 = vld [vmem:[%s7743_s7 + $0x240] ss:$8 sps:$4 sm:$0xff]  }
 0x3df   :  { %4195 = vmatprep.subr.bf16.mxu0 %v5655_v0  ;;  %v5712_v0 = vld [vmem:[%s7743_s7 + $0x254] ss:$8 sps:$4 sm:$0xff]  }
 0x3e2   :  { %4196 = vmatpush1.bf16.msra.mxu0 %v5653_v1  ;;  %v5710_v1 = vld [vmem:[%s7743_s7 + $0x250] ss:$8 sps:$4 sm:$0xff]  }
 0x3e3   :  { %4197 = vmatprep.subr.bf16.mxu0 %v5658_v2  ;;  %v5715_v2 = vld [vmem:[%s7743_s7 + $0x264] ss:$8 sps:$4 sm:$0xff]  }
 0x3e6   :  { %4198 = vmatpush1.bf16.msra.mxu0 %v5656_v3  ;;  %v5713_v3 = vld [vmem:[%s7743_s7 + $0x260] ss:$8 sps:$4 sm:$0xff]  }
 0x3e7   :  { %4199 = vmatprep.subr.bf16.mxu0 %v5661_v62  ;;  %v5718_v62 = vld [vmem:[%s7743_s7 + $0x274] ss:$8 sps:$4 sm:$0xff]  }
 0x3ea   :  { %4200 = vmatpush1.bf16.msra.mxu0 %v5659_v4  ;;  %v5716_v4 = vld [vmem:[%s7743_s7 + $0x270] ss:$8 sps:$4 sm:$0xff]  }
 0x3eb   :  { %4201 = vmatprep.subr.bf16.mxu0 %v5664_v5  ;;  %v5724_v5 = vld [vmem:[%s7743_s7 + $0x284] ss:$8 sps:$4 sm:$0xff]  }
 0x3ee   :  { %4202 = vmatpush1.bf16.msra.mxu0 %v5662_v6  ;;  %v5722_v6 = vld [vmem:[%s7743_s7 + $0x280] ss:$8 sps:$4 sm:$0xff]  }
 0x3ef   :  { %4203 = vmatprep.subr.bf16.mxu0 %v5667_v7  ;;  %v5730_v7 = vld [vmem:[%s7743_s7 + $0x294] ss:$8 sps:$4 sm:$0xff]  }
 0x3f2   :  { %4204 = vmatpush1.bf16.msra.mxu0 %v5665_v9  ;;  %v5728_v9 = vld [vmem:[%s7743_s7 + $0x290] ss:$8 sps:$4 sm:$0xff]  }
 0x3f3   :  { %4205 = vmatprep.subr.bf16.mxu0 %v5670_v10  ;;  %v5736_v10 = vld [vmem:[%s7743_s7 + $0x2a4] ss:$8 sps:$4 sm:$0xff]  }
 0x3f6   :  { %4206 = vmatpush1.bf16.msra.mxu0 %v5668_v12  ;;  %v5734_v12 = vld [vmem:[%s7743_s7 + $0x2a0] ss:$8 sps:$4 sm:$0xff]  }
 0x3f7   :  { %4207 = vmatprep.subr.bf16.mxu0 %v5673_v13  ;;  %v5742_v13 = vld [vmem:[%s7743_s7 + $0x2b4] ss:$8 sps:$4 sm:$0xff]  }
 0x3fa   :  { %4208 = vmatpush1.bf16.msra.mxu0 %v5671_v14  ;;  %v5740_v14 = vld [vmem:[%s7743_s7 + $0x2b0] ss:$8 sps:$4 sm:$0xff]  }
 0x3fb   :  { %4209 = vmatprep.subr.bf16.mxu0 %v5676_v15  ;;  %v5748_v15 = vld [vmem:[%s7743_s7 + $0x2c4] ss:$8 sps:$4 sm:$0xff]  }
 0x3fe   :  { %4210 = vmatpush1.bf16.msra.mxu0 %v5674_v17  ;;  %v2591_v17 = vsub.s32 4, %v6772_v60 }
 0x3ff   :  { %4211 = vmatprep.subr.bf16.mxu0 %v5679_v8  ;;  %v5746_v8 = vld [vmem:[%s7743_s7 + $0x2c0] ss:$8 sps:$4 sm:$0xff]  }
 0x402   :  { %4212 = vmatpush1.bf16.msra.mxu0 %v5677_v24  ;;  %v5754_v24 = vld [vmem:[%s7743_s7 + $0x2d4] ss:$8 sps:$4 sm:$0xff]  }
 0x403   :  { %4213 = vmatprep.subr.bf16.mxu0 %v5682_v28  ;;  %v2592_v28 = vrot.slane %v7441_v16, %v2591_v17  ;;  %v5059_v17 = vld [vmem:[%s7747_s10] ss:$0 sm:$0xff] }
 0x406   :  { %4214 = vmatpush1.bf16.msra.mxu0 %v5680_v18  ;;  %v2599_v18 = vsub.s32 6, %v6772_v60 }
 0x407   :  { %4215 = vmatprep.subr.bf16.mxu0 %v5685_v32  ;;  %v2603_v32 = vsub.s32 7, %v6772_v60  ;;  %v5758_v60 = vld [vmem:[%s7743_s7 + $0x2e0] ss:$8 sps:$4 sm:$0xff]  }
 0x408   :  { %v2600_v21 = vrot.slane %v7441_v16, %v2599_v18 }
 0x40a   :  { %4216 = vmatpush1.bf16.msra.mxu0 %v5683_v31  ;;  %v5760_v31 = vld [vmem:[%s7743_s7 + $0x2e4] ss:$8 sps:$4 sm:$0xff]  }
 0x40b   :  { %4217 = vmatprep.subr.bf16.mxu0 %v5688_v20  ;;  %v3370_v20 = vadd.f32 %v7453_v30, %v2592_v28 }
 0x40d   :  { %v3429_v27 = vmul.f32 0.01, %v3370_v20  ;;  %vm3421_vm12 = vcmp.ge.f32.partialorder %v3370_v20, 0.0 }
 0x40e   :  { %4218 = vmatpush1.bf16.msra.mxu0 %v5686_v23  ;;  %v2604_v23 = vrot.slane %v7441_v16, %v2603_v32 }
 0x40f   :  { %v3328_v36 = vpop.f32.mrb[12].mxu1  ;;  %4219 = vmatprep.subr.bf16.mxu0 %v5691_v25  ;;  %v3437_v49 = vsel %vm3421_vm12, %v3370_v20, %v3429_v27 }
 0x410   :  { %v3329_v33 = vadd.f32 %v3328_v36, %v2584_v26  ;;  %v3330_v34 = vpop.f32.mrb[13].mxu1  ;;  %v5766_v26 = vld [vmem:[%s7743_s7 + $0x2f4] ss:$8 sps:$4 sm:$0xff]  }
 0x411   :  { %v3331_v37 = vadd.f32 %v3330_v34, %v2588_v11  ;;  %v3332_v35 = vpop.f32.mrb[14].mxu1 }
 0x412   :  { %vm3419_vm10 = vcmp.ge.f32.partialorder %v3329_v33, 0.0  ;;  %v3427_v38 = vmul.f32 0.01, %v3329_v33  ;;  %v3333_v39 = vpop.f32.mrb[15].mxu1  ;;  %4220 = vmatpush1.bf16.msra.mxu0 %v5689_v52 }
 0x413   :  { %vm3420_vm11 = vcmp.ge.f32.partialorder %v3331_v37, 0.0  ;;  %v3428_v40 = vmul.f32 0.01, %v3331_v37  ;;  %4221 = vmatprep.subr.bf16.mxu0 %v5694_v29  ;;  %v3445_v39 = vpack.c.bf16 %v3437_v49, %v3437_v49 }
 0x414   :  { %v3435_v42 = vsel %vm3419_vm10, %v3329_v33, %v3427_v38  ;;  %v5764_v33 = vld [vmem:[%s7743_s7 + $0x2f0] ss:$8 sps:$4 sm:$0xff]   ;;  %v5769_v38 = vld [vmem:[%s7745_s9] sm:$0xff]  }
 0x415   :  { %v3436_v43 = vsel %vm3420_vm11, %v3331_v37, %v3428_v40  ;;  %v3443_v47 = vpack.c.bf16 %v3435_v42, %v3435_v42  ;;  %v5771_v42 = vld [vmem:[%s7745_s9 + $0x10] sm:$0xff]  }
 0x416   :  { %4222 = vmatpush1.bf16.msra.mxu0 %v5692_v50  ;;  %v3444_v45 = vpack.c.bf16 %v3436_v43, %v3436_v43  ;;  %v5772_v43 = vld [vmem:[%s7745_s9 + $0x18] sm:$0xff]  }
 0x417   :  { %4232 = vmatprep.subr.bf16.mxu0 %v5697_v41  ;;  %v5770_v41 = vld [vmem:[%s7745_s9 + $0x8] sm:$0xff]  }
 0x418   :  { %4223 = vmatprep.mubr.bf16.mxu0 %v3444_v45  ;;  %v5774_v45 = vld [vmem:[%s7745_s9 + $0x28] sm:$0xff]  }
 0x419   :  { %4224 = vmatmul.mubr.bf16.vlgmr.msra.gmra.mrb[12].mxu0 %v3443_v47  ;;  %v5776_v47 = vld [vmem:[%s7745_s9 + $0x38] sm:$0xff]  }
 0x41a   :  { %4233 = vmatpush1.bf16.msra.mxu0 %v5695_v46  ;;  %4264 = vmatprep.mubr.bf16.mxu0 %v3446_v51  ;;  %v5775_v46 = vld [vmem:[%s7745_s9 + $0x30] sm:$0xff]   ;;  %v5778_v51 = vld [vmem:[%s7745_s9 + $0x48] sm:$0xff]  }
 0x41b   :  { %4234 = vmatprep.subr.bf16.mxu0 %v5700_v48  ;;  %v5777_v48 = vld [vmem:[%s7745_s9 + $0x40] sm:$0xff]  }
 0x41e   :  { %4235 = vmatpush1.bf16.msra.mxu0 %v5698_v53  ;;  %v5779_v53 = vld [vmem:[%s7745_s9 + $0x50] sm:$0xff]  }
 0x41f   :  { %4236 = vmatprep.subr.bf16.mxu0 %v5703_v54  ;;  %v5780_v54 = vld [vmem:[%s7745_s9 + $0x58] sm:$0xff]  }
 0x422   :  { %4237 = vmatpush1.bf16.msra.mxu0 %v5701_v55  ;;  %v5781_v55 = vld [vmem:[%s7745_s9 + $0x60] ss:$0 sps:$4 sm:$0xff]  }
 0x423   :  { %4238 = vmatprep.subr.bf16.mxu0 %v5706_v56  ;;  %v4435_v56 = vsel %vm4433_vm0, %v5781_v55, 0 }
 0x426   :  { %4239 = vmatpush1.bf16.msra.mxu0 %v5704_v57  ;;  %v3562_v57 = vld [vmem:[%s7746_s8] sm:$0x3] }
 0x427   :  { %4240 = vmatprep.subr.bf16.mxu0 %v5709_v58  ;;  %v3567_v58 = vrot.slane %v3562_v57, %v6775_v61 }
 0x42a   :  { %4241 = vmatpush1.bf16.msra.mxu0 %v5707_v59  ;;  %v3571_v59 = vrot.slane %v3562_v57, %v6783_v63 }
 0x42b   :  { %4242 = vmatprep.subr.bf16.mxu0 %v5712_v0 }
 0x42e   :  { %4243 = vmatpush1.bf16.msra.mxu0 %v5710_v1 }
 0x42f   :  { %4244 = vmatprep.subr.bf16.mxu0 %v5715_v2 }
 0x432   :  { %4245 = vmatpush1.bf16.msra.mxu0 %v5713_v3 }
 0x433   :  { %4246 = vmatprep.subr.bf16.mxu0 %v5718_v62 }
 0x436   :  { %4247 = vmatpush1.bf16.msra.mxu0 %v5716_v4 }
 0x437   :  { %4248 = vmatprep.subr.bf16.mxu0 %v5724_v5 }
 0x43a   :  { %4249 = vmatpush1.bf16.msra.mxu0 %v5722_v6 }
 0x43b   :  { %4250 = vmatprep.subr.bf16.mxu0 %v5730_v7 }
 0x43e   :  { %4251 = vmatpush1.bf16.msra.mxu0 %v5728_v9 }
 0x43f   :  { %4252 = vmatprep.subr.bf16.mxu0 %v5736_v10 }
 0x442   :  { %4253 = vmatpush1.bf16.msra.mxu0 %v5734_v12 }
 0x443   :  { %4254 = vmatprep.subr.bf16.mxu0 %v5742_v13 }
 0x446   :  { %4255 = vmatpush1.bf16.msra.mxu0 %v5740_v14 }
 0x447   :  { %4256 = vmatprep.subr.bf16.mxu0 %v5748_v15 }
 0x44a   :  { %4257 = vmatpush1.bf16.msra.mxu0 %v5746_v8 }
 0x44b   :  { %4258 = vmatprep.subr.bf16.mxu0 %v5754_v24 }
 0x44e   :  { %4259 = vmatpush1.bf16.msra.mxu0 %v5752_v19 }
 0x44f   :  { %v3410_v25 = vpop.f32.mrb[16].mxu1  ;;  %4260 = vmatprep.subr.bf16.mxu0 %v5760_v31 }
 0x450   :  { %v3411_v11 = vadd.f32 %v3410_v25, %v2600_v21  ;;  %v3412_v52 = vpop.f32.mrb[17].mxu1 }
 0x451   :  { %v3413_v30 = vadd.f32 %v3412_v52, %v2604_v23  ;;  %v3414_v36 = vpop.f32.mrb[18].mxu1 }
 0x452   :  { %vm3423_vm13 = vcmp.ge.f32.partialorder %v3411_v11, 0.0  ;;  %v3431_v29 = vmul.f32 0.01, %v3411_v11  ;;  %v3415_v16 = vpop.f32.mrb[19].mxu1  ;;  %4261 = vmatpush1.bf16.msra.mxu0 %v5758_v60 }
 0x453   :  { %vm3424_vm14 = vcmp.ge.f32.partialorder %v3413_v30, 0.0  ;;  %v3432_v34 = vmul.f32 0.01, %v3413_v30  ;;  %4262 = vmatprep.subr.bf16.mxu0 %v5766_v26 }
 0x454   :  { %v3439_v37 = vsel %vm3423_vm13, %v3411_v11, %v3431_v29 }
 0x455   :  { %v3440_v35 = vsel %vm3424_vm14, %v3413_v30, %v3432_v34  ;;  %v3447_v40 = vpack.c.bf16 %v3439_v37, %v3439_v37 }
 0x456   :  { %v3448_v50 = vpack.c.bf16 %v3440_v35, %v3440_v35  ;;  %4263 = vmatpush1.bf16.msra.mxu0 %v5764_v33 }
 0x458   :  { %5058 = vmatprep.mubr.msk.bf16.mxu1 %vm4139_vm15, %v3448_v50 }
 0x459   :  { %4265 = vmatmul.mubr.bf16.vlgmr.msra.gmra.mrb[12].mxu0 %v3445_v39  ;;  %4306 = vmatmul.mubr.bf16.vlgmr.msra.gmra.mrb[20].mxu1 %v3447_v40 }
 0x45a   :  { %4438 = vmatpush1.bf16.msra.mxu1 %v5769_v38 }
 0x45b   :  { %4439 = vmatprep.subr.bf16.mxu1 %v5786_v22 }
 0x45e   :  { %4440 = vmatpush1.bf16.msra.mxu1 %v5770_v41 }
 0x45f   :  { %4441 = vmatprep.subr.bf16.mxu1 %v5786_v22 }
 0x462   :  { %4442 = vmatpush1.bf16.msra.mxu1 %v5771_v42 }
 0x463   :  { %4443 = vmatprep.subr.bf16.mxu1 %v5786_v22 }
 0x466   :  { %4444 = vmatpush1.bf16.msra.mxu1 %v5772_v43 }
 0x467   :  { %4445 = vmatprep.subr.bf16.mxu1 %v5786_v22 }
 0x46a   :  { %4446 = vmatpush1.bf16.msra.mxu1 %v5773_v44 }
 0x46b   :  { %4447 = vmatprep.subr.bf16.mxu1 %v5786_v22 }
 0x46e   :  { %4448 = vmatpush1.bf16.msra.mxu1 %v5774_v45 }
 0x46f   :  { %4449 = vmatprep.subr.bf16.mxu1 %v5786_v22 }
 0x472   :  { %4450 = vmatpush1.bf16.msra.mxu1 %v5775_v46 }
 0x473   :  { %4451 = vmatprep.subr.bf16.mxu1 %v5786_v22 }
 0x476   :  { %4452 = vmatpush1.bf16.msra.mxu1 %v5776_v47 }
 0x477   :  { %4453 = vmatprep.subr.bf16.mxu1 %v5786_v22 }
 0x47a   :  { %4454 = vmatpush1.bf16.msra.mxu1 %v5777_v48 }
 0x47b   :  { %4455 = vmatprep.subr.bf16.mxu1 %v5786_v22 }
 0x47e   :  { %4456 = vmatpush1.bf16.msra.mxu1 %v5778_v51 }
 0x47f   :  { %4457 = vmatprep.subr.bf16.mxu1 %v5786_v22 }
 0x482   :  { %4458 = vmatpush1.bf16.msra.mxu1 %v5779_v53 }
 0x483   :  { %4459 = vmatprep.subr.bf16.mxu1 %v5786_v22 }
 0x486   :  { %4460 = vmatpush1.bf16.msra.mxu1 %v5780_v54 }
 0x487   :  { %4461 = vmatprep.subr.bf16.mxu1 %v5786_v22 }
 0x48a   :  { %4462 = vmatpush1.bf16.msra.mxu1 %v4435_v56 }
 0x52c   :  { %v4266_v0 = vpop.f32.mrb[12].mxu0  ;;  %v4307_v1 = vpop.f32.mrb[20].mxu1 }
 0x52d   :  { %v5082_v2 = vadd.f32 %v4266_v0, %v3567_v58  ;;  %v4268_v3 = vpop.f32.mrb[13].mxu0  ;;  %v4309_v22 = vpop.f32.mrb[21].mxu1 }
 0x52e   :  { %v5084_v62 = vadd.f32 %v4268_v3, %v3571_v59  ;;  %v4270_v4 = vpop.f32.mrb[14].mxu0  ;;  %v4311_v5 = vpop.f32.mrb[22].mxu1 }
 0x52f   :  { %v5083_v6 = vadd.f32 %v5082_v2, %v4307_v1  ;;  %v4271_v7 = vpop.f32.mrb[15].mxu0  ;;  %v4312_v9 = vpop.f32.mrb[23].mxu1 }
 0x530   :  { %v5085_v10 = vadd.f32 %v5084_v62, %v4309_v22 }
 0x531   :  { %vm4314_vm1 = vcmp.ge.f32.partialorder %v5083_v6, 0.0  ;;  %v4316_v12 = vmul.f32 0.01, %v5083_v6 }
 0x532   :  { %vm4315_vm2 = vcmp.ge.f32.partialorder %v5085_v10, 0.0  ;;  %v4317_v13 = vmul.f32 0.01, %v5085_v10 }
 0x533   :  { %v4318_v14 = vsel %vm4314_vm1, %v5083_v6, %v4316_v12 }
 0x534   :  { %v4319_v61 = vsel %vm4315_vm2, %v5085_v10, %v4317_v13  ;;  %v4320_v15 = vpack.c.bf16 %v4318_v14, %v4318_v14 }
 0x535   :  { %v4321_v63 = vpack.c.bf16 %v4319_v61, %v4319_v61 }
 0x537   :  { %5073 = vmatprep.mubr.msk.bf16.mxu1 %vm4429_vm3, %v4321_v63 }
 0x538   :  { %4470 = vmatmul.mubr.bf16.vlgmr.msra.gmra.mrb[24].mxu1 %v4320_v15 }
 0x60b   :  { %v4471_v8 = vpop.f32.mrb[24].mxu1 }
 0x60c   :  { %v4472_v24 = vadd.f32 %v5059_v17, %v4471_v8  ;;  %v4473_v28 = vpop.f32.mrb[25].mxu1 }
 0x60d   :  { %v4474_v18 = vpop.f32.mrb[26].mxu1 }
 0x60e   :  { %v4475_v32 = vpop.f32.mrb[27].mxu1  ;;  %v4478_v19 = vsel %vm4477_vm4, %v4472_v24, -inf }
 0x60f   :  { %4479 = vmax.xlane.f32.xlu0 %v4478_v19 }
 0x69c   :  { %v4480_v31 = vpop.xlane.xlu0 %4479 }
 0x69d   :  { %v4481_v20 = vsub.f32 %v4472_v24, %v4480_v31 }
 0x69f   :  { %v4482_v21 = vmul.f32 1.442695, %v4481_v20 }
 0x6a1   :  { %5782 = vpow2.f32 %v4482_v21 }
 0x6ab   :  { %v5783_v23 = vpop.eup %5782 }
 0x6ac   :  { %v4484_v60 = vsel %vm4477_vm4, %v5783_v23, 0.0 }
 0x6ad   :  { %4485 = vadd.xlane.f32.xlu0 %v4484_v60 }
 0x73a   :  { %v4486_v25 = vpop.xlane.xlu0 %4485 }
 0x73b   :  { %5784 = vlog2.f32 %v4486_v25 }
 0x745   :  { %v5785_v26 = vpop.eup %5784 }
 0x746   :  { %v4488_v27 = vmul.f32 0.6931472, %v5785_v26 }
 0x748   :  { %v4489_v11 = vsub.f32 %v4481_v20, %v4488_v27 }
 0x74a   :  { %4490 = vst.msk [vmem:[%s7748_s11] sm:$0x3f] %vm4477_vm4, %v4489_v11 }

</bundles_post_ra>
